<compile_context>
chip_gen: v5e
topology: v5e:2x2
jax: 0.10.0
libtpu: 0.0.40
codegen_flags: <defaults>
</compile_context>

<pallas_src>
import functools
import math

import jax
import jax.numpy as jnp
from jax.experimental import pallas as pl
from jax.experimental.pallas import tpu as pltpu

LN_EPS = 1e-5
NEG_INF = -1e9

# Per-layer stacked arrays, in kernel-argument order.
_WEIGHT_ORDER = ("sa_wqkv", "sa_wo", "ca_wq", "ca_wkv", "ca_wo",
                 "ff_w1", "ff_w2", "vec_d", "ff_b1")

# Row layout of the packed (L, 16, D) f32 vector array.
_ROW = dict(ln1_w=0, ln1_b=1, ln2_w=2, ln2_b=3, ln3_w=4, ln3_b=5,
            sa_bq=6, sa_bk=7, sa_bv=8, sa_bo=9,
            ca_bq=10, ca_bk=11, ca_bv=12, ca_bo=13, ff_b2=14)


# ----------------------------------------------------------------------------
# In-kernel helpers
# ----------------------------------------------------------------------------
def _layernorm(v, w, b):
    # v: (B, T, D) f32; w/b: (1, D) f32
    mu = jnp.mean(v, axis=-1, keepdims=True)
    var = jnp.mean(jnp.square(v - mu), axis=-1, keepdims=True)
    return (v - mu) * jax.lax.rsqrt(var + LN_EPS) * w + b


def _attn_core(q16, k16, v16, wo, bo, bias, B, Tq, Tk, *, nhead, compute_dtype):
    """q16: (B*Tq, D) bf16; k16/v16: (B*Tk, D) bf16; wo: (D, D) bf16; bo: (1, D) f32."""
    D = q16.shape[-1]
    hd = D // nhead
    scale = 1.0 / math.sqrt(hd)

    heads = []
    for h in range(nhead):          # static unroll; nhead is small
        sl = slice(h * hd, (h + 1) * hd)
        qh = q16[:, sl].reshape(B, Tq, hd)
        kh = k16[:, sl].reshape(B, Tk, hd)
        vh = v16[:, sl].reshape(B, Tk, hd)

        s = jnp.einsum("bqd,bkd->bqk", qh, kh,
                       preferred_element_type=jnp.float32) * scale   # (B, Tq, Tk) f32
        if bias is not None:
            s = s + bias
        s = s - jnp.max(s, axis=-1, keepdims=True)
        p = jnp.exp(s)
        p = p * pl.reciprocal(jnp.sum(p, axis=-1, keepdims=True), approx=True)

        oh = jnp.einsum("bqk,bkd->bqd", p.astype(compute_dtype), vh,
                        preferred_element_type=jnp.float32)           # (B, Tq, hd) f32
        heads.append(oh)

    # Single full-depth (K = D) output projection instead of nhead K=hd matmuls.
    o = jnp.concatenate(heads, axis=-1).reshape(B * Tq, D).astype(compute_dtype)
    out = jnp.dot(o, wo, preferred_element_type=jnp.float32) + bo
    return out.reshape(B, Tq, D)


# ----------------------------------------------------------------------------
# Fused decoder kernel (grid = (batch_blocks, num_layers))
# ----------------------------------------------------------------------------
def decoder_kernel(
    x_ref, mem_ref, mask_ref,
    sa_wqkv, sa_wo, ca_wq, ca_wkv, ca_wo, ff_w1, ff_w2, vec_ref, ffb1_ref,
    flnw_ref, flnb_ref,
    o_ref, x_state,
    *, nhead, compute_dtype,
):
    l = pl.program_id(1)
    num_layers = pl.num_programs(1)

    @pl.when(l == 0)
    def _init():
        x_state[...] = x_ref[...].astype(jnp.float32)

    x = x_state[...]                       # (B, Tt, D) f32 residual stream
    mem16 = mem_ref[...]                   # (B, Ts, D) bf16 (kept narrow)
    sbias = mask_ref[...]                  # (Tt, Tt) additive float mask

    vecs = vec_ref[0]                      # (16, D) f32 packed per-layer vectors
    def row(name):
        r = _ROW[name]
        return vecs[r:r + 1]               # (1, D)

    ff_b1 = ffb1_ref[0]                    # (1, F) f32

    B, Tt, D = x.shape
    Ts = mem16.shape[1]

    # --- self-attention block (pre-LN), fused QKV projection ---
    t2 = _layernorm(x, row("ln1_w"), row("ln1_b"))
    t2f = t2.reshape(B * Tt, D).astype(compute_dtype)
    qkv = jnp.dot(t2f, sa_wqkv[0], preferred_element_type=jnp.float32)   # (B*Tt, 3D)
    q16 = (qkv[:, :D] + row("sa_bq")).astype(compute_dtype)
    k16 = (qkv[:, D:2 * D] + row("sa_bk")).astype(compute_dtype)
    v16 = (qkv[:, 2 * D:] + row("sa_bv")).astype(compute_dtype)
    x = x + _attn_core(q16, k16, v16, sa_wo[0], row("sa_bo"), sbias, B, Tt, Tt,
                       nhead=nhead, compute_dtype=compute_dtype)

    # --- cross-attention block (no mask), fused KV projection ---
    t2 = _layernorm(x, row("ln2_w"), row("ln2_b"))
    t2f = t2.reshape(B * Tt, D).astype(compute_dtype)
    memf = mem16.reshape(B * Ts, D)                                       # bf16
    q16 = (jnp.dot(t2f, ca_wq[0], preferred_element_type=jnp.float32)
           + row("ca_bq")).astype(compute_dtype)
    kv = jnp.dot(memf, ca_wkv[0], preferred_element_type=jnp.float32)     # (B*Ts, 2D)
    k16 = (kv[:, :D] + row("ca_bk")).astype(compute_dtype)
    v16 = (kv[:, D:] + row("ca_bv")).astype(compute_dtype)
    x = x + _attn_core(q16, k16, v16, ca_wo[0], row("ca_bo"), None, B, Tt, Ts,
                       nhead=nhead, compute_dtype=compute_dtype)

    # --- feed-forward block (bias + ReLU + downcast fused) ---
    t2 = _layernorm(x, row("ln3_w"), row("ln3_b"))
    h = jnp.maximum(
        jnp.dot(t2.reshape(B * Tt, D).astype(compute_dtype), ff_w1[0],
                preferred_element_type=jnp.float32) + ff_b1,
        0.0,
    ).astype(compute_dtype)
    y = jnp.dot(h, ff_w2[0], preferred_element_type=jnp.float32) + row("ff_b2")
    x = x + y.reshape(B, Tt, D)

    x_state[...] = x

    @pl.when(l == num_layers - 1)
    def _finalize():
        o_ref[...] = _layernorm(x, flnw_ref[...], flnb_ref[...]).astype(o_ref.dtype)


# ----------------------------------------------------------------------------
# Parameter packing (torch layout in -> kernel layout out)
# ----------------------------------------------------------------------------
def pack_params(layer_params, final_ln, param_dtype=jnp.bfloat16):
    D = layer_params[0]["sa_out_w"].shape[0]

    def stack(fn, dt):
        return jnp.stack([fn(p).astype(dt) for p in layer_params], axis=0)

    def vec_rows(p):
        rows = [None] * 16
        rows[_ROW["ln1_w"]] = p["ln1_w"].reshape(D)
        rows[_ROW["ln1_b"]] = p["ln1_b"].reshape(D)
        rows[_ROW["ln2_w"]] = p["ln2_w"].reshape(D)
        rows[_ROW["ln2_b"]] = p["ln2_b"].reshape(D)
        rows[_ROW["ln3_w"]] = p["ln3_w"].reshape(D)
        rows[_ROW["ln3_b"]] = p["ln3_b"].reshape(D)
        rows[_ROW["sa_bq"]] = p["sa_in_b"][0, :D]
        rows[_ROW["sa_bk"]] = p["sa_in_b"][0, D:2 * D]
        rows[_ROW["sa_bv"]] = p["sa_in_b"][0, 2 * D:]
        rows[_ROW["sa_bo"]] = p["sa_out_b"].reshape(D)
        rows[_ROW["ca_bq"]] = p["ca_in_b"][0, :D]
        rows[_ROW["ca_bk"]] = p["ca_in_b"][0, D:2 * D]
        rows[_ROW["ca_bv"]] = p["ca_in_b"][0, 2 * D:]
        rows[_ROW["ca_bo"]] = p["ca_out_b"].reshape(D)
        rows[_ROW["ff_b2"]] = p["ff_b2"].reshape(D)
        rows[15] = jnp.zeros((D,), jnp.float32)
        return jnp.stack(rows, axis=0)                         # (16, D)

    return {
        "sa_wqkv": stack(lambda p: p["sa_in_w"].T, param_dtype),        # (L, D, 3D)
        "sa_wo":   stack(lambda p: p["sa_out_w"].T, param_dtype),       # (L, D, D)
        "ca_wq":   stack(lambda p: p["ca_in_w"][:D].T, param_dtype),    # (L, D, D)
        "ca_wkv":  stack(lambda p: p["ca_in_w"][D:].T, param_dtype),    # (L, D, 2D)
        "ca_wo":   stack(lambda p: p["ca_out_w"].T, param_dtype),       # (L, D, D)
        "ff_w1":   stack(lambda p: p["ff_w1"].T, param_dtype),          # (L, D, F)
        "ff_w2":   stack(lambda p: p["ff_w2"].T, param_dtype),          # (L, F, D)
        "vec_d":   stack(vec_rows, jnp.float32),                        # (L, 16, D)
        "ff_b1":   stack(lambda p: p["ff_b1"], jnp.float32),            # (L, 1, F)
        "fln_w":   final_ln["w"].astype(jnp.float32),                   # (1, D)
        "fln_b":   final_ln["b"].astype(jnp.float32),                   # (1, D)
    }


# ----------------------------------------------------------------------------
# Wrapper
# ----------------------------------------------------------------------------
def _multi_tensorcore():
    """True on chips with >1 TensorCore per device (v7x, v4/v5p megacore)."""
    try:
        kind = jax.devices()[0].device_kind.lower()
    except Exception:
        return False
    return any(t in kind for t in ("v7", "v4", "v5p"))


def _vmem_limit_bytes(bb, Tt, Ts, D, F, wbytes=2):
    layer_w = (8 * D * D + 2 * D * F) * wbytes          # bf16 matmul weights / layer
    layer_v = (16 * D + F) * 4                          # packed f32 vectors / layer
    io_blk = (bb * Tt * D * 4 + bb * Ts * D * 2 + Tt * Tt * 4
              + bb * Tt * D * 4 + 2 * D * 4)
    pipelined = 2 * (layer_w + layer_v + io_blk)        # double-buffered blocks
    scratch = bb * Tt * D * 4                           # resident residual stream
    acts = (6 * bb * Tt * D + 6 * bb * Ts * D + 2 * bb * Tt * F
            + 2 * bb * Tt * max(Tt, Ts)) * 4            # rough activation high-water
    limit = int((pipelined + scratch + acts) * 1.25) + (4 << 20)
    limit = max(limit, 32 << 20)
    try:
        cap = int(pltpu.get_tpu_info().vmem_capacity_bytes)
    except Exception:
        cap = 64 << 20
    return min(limit, int(cap * 0.9))


def transformer_decoder_forward(tgt_tnd, mem_tnd, packed, nhead, tgt_mask=None,
                                batch_block=None, compute_dtype=jnp.bfloat16,
                                out_dtype=jnp.float32):
    """tgt_tnd: (T_tgt, N, D), mem_tnd: (T_src, N, D) — PyTorch axis convention."""
    Tt, N, D = tgt_tnd.shape
    Ts = mem_tnd.shape[0]
    L = packed["vec_d"].shape[0]
    F = packed["ff_b1"].shape[-1]

    x = jnp.transpose(tgt_tnd, (1, 0, 2)).astype(jnp.float32)       # (N, Tt, D)
    mem = jnp.transpose(mem_tnd, (1, 0, 2)).astype(compute_dtype)   # (N, Ts, D) bf16

    if tgt_mask is None:
        mask = jnp.zeros((Tt, Tt), jnp.float32)
    else:
        mask = tgt_mask.astype(jnp.float32)

    if batch_block is None:
        # Single TC (v5e/v6e): whole batch per block -> weights streamed once.
        # Multi TC (v7x/v4/v5p): split into 2 blocks so each core owns one.
        if _multi_tensorcore() and N >= 2 and N % 2 == 0:
            batch_block = N // 2
        else:
            batch_block = N
    assert N % batch_block == 0, "batch_block must divide N"
    nb = N // batch_block

    weights = [packed[k] for k in _WEIGHT_ORDER]

    in_specs = [
        pl.BlockSpec((batch_block, Tt, D), lambda b, l: (b, 0, 0)),   # x
        pl.BlockSpec((batch_block, Ts, D), lambda b, l: (b, 0, 0)),   # memory (bf16)
        pl.BlockSpec((Tt, Tt), lambda b, l: (0, 0)),                  # self-attn mask
    ]
    for arr in weights:                                               # per-layer stacked
        in_specs.append(pl.BlockSpec((1,) + arr.shape[1:], lambda b, l: (l, 0, 0)))
    in_specs += [
        pl.BlockSpec((1, D), lambda b, l: (0, 0)),                    # final LN w
        pl.BlockSpec((1, D), lambda b, l: (0, 0)),                    # final LN b
    ]

    out = pl.pallas_call(
        functools.partial(decoder_kernel, nhead=nhead, compute_dtype=compute_dtype),
        out_shape=jax.ShapeDtypeStruct((N, Tt, D), out_dtype),
        grid_spec=pltpu.PrefetchScalarGridSpec(
            num_scalar_prefetch=0,
            grid=(nb, L),
            in_specs=in_specs,
            out_specs=pl.BlockSpec((batch_block, Tt, D), lambda b, l: (b, 0, 0)),
            scratch_shapes=[pltpu.VMEM((batch_block, Tt, D), jnp.float32)],
        ),
        compiler_params=pltpu.CompilerParams(
            dimension_semantics=("parallel", "arbitrary"),
            vmem_limit_bytes=_vmem_limit_bytes(batch_block, Tt, Ts, D, F),
        ),
    )(x, mem, mask, *weights, packed["fln_w"], packed["fln_b"])

    return jnp.transpose(out, (1, 0, 2))  # back to (T_tgt, N, D)


# ----------------------------------------------------------------------------
# Deterministic parameter init (matches nn.Module shapes, torch layout)
# ----------------------------------------------------------------------------
def init_params(key, d_model, nhead, num_layers, dim_feedforward):
    layers = []
    for _ in range(num_layers):
        ks = jax.random.split(key, 20)
        key = ks[0]

        def nrm(k, shape, fan_in):
            return jax.random.normal(k, shape, jnp.float32) / math.sqrt(fan_in)

        def small(k, shape, s=0.02):
            return s * jax.random.normal(k, shape, jnp.float32)

        p = {
            "ln1_w": 1.0 + small(ks[9], (1, d_model), 0.05),
            "ln1_b": small(ks[10], (1, d_model)),
            "sa_in_w": nrm(ks[1], (3 * d_model, d_model), d_model),
            "sa_in_b": small(ks[11], (1, 3 * d_model)),
            "sa_out_w": nrm(ks[2], (d_model, d_model), d_model),
            "sa_out_b": small(ks[12], (1, d_model)),
            "ln2_w": 1.0 + small(ks[13], (1, d_model), 0.05),
            "ln2_b": small(ks[14], (1, d_model)),
            "ca_in_w": nrm(ks[3], (3 * d_model, d_model), d_model),
            "ca_in_b": small(ks[15], (1, 3 * d_model)),
            "ca_out_w": nrm(ks[4], (d_model, d_model), d_model),
            "ca_out_b": small(ks[16], (1, d_model)),
            "ln3_w": 1.0 + small(ks[17], (1, d_model), 0.05),
            "ln3_b": small(ks[18], (1, d_model)),
            "ff_w1": nrm(ks[5], (dim_feedforward, d_model), d_model),
            "ff_b1": small(ks[6], (1, dim_feedforward)),
            "ff_w2": nrm(ks[7], (d_model, dim_feedforward), dim_feedforward),
            "ff_b2": small(ks[8], (1, d_model)),
        }
        layers.append(p)
    kf1, kf2 = jax.random.split(key, 2)
    final_ln = {"w": 1.0 + 0.05 * jax.random.normal(kf1, (1, d_model), jnp.float32),
                "b": 0.02 * jax.random.normal(kf2, (1, d_model), jnp.float32)}
    return layers, final_ln


def round_weights(p, param_dtype):
    """Round the matmul weights exactly like the kernel stores them (bf16)."""
    rp = dict(p)
    for k in ("sa_in_w", "sa_out_w", "ca_in_w", "ca_out_w", "ff_w1", "ff_w2"):
        rp[k] = p[k].astype(param_dtype).astype(jnp.float32)
    return rp


# ----------------------------------------------------------------------------
# Pure-JAX reference (same math, high precision) for correctness check
# ----------------------------------------------------------------------------
def _ref_ln(v, w, b):
    mu = v.mean(-1, keepdims=True)
    var = ((v - mu) ** 2).mean(-1, keepdims=True)
    return (v - mu) / jnp.sqrt(var + LN_EPS) * w + b


def _ref_mha(qin, kvin, iw, ib, ow, ob, bias, nhead):
    N, Tq, D = qin.shape
    Tk = kvin.shape[1]
    hd = D // nhead
    hi = jax.lax.Precision.HIGHEST
    q = jnp.einsum("ntd,ed->nte", qin, iw[:D], precision=hi) + ib[0, :D]
    k = jnp.einsum("nsd,ed->nse", kvin, iw[D:2 * D], precision=hi) + ib[0, D:2 * D]
    v = jnp.einsum("nsd,ed->nse", kvin, iw[2 * D:], precision=hi) + ib[0, 2 * D:]
    q = q / math.sqrt(hd)
    qh = q.reshape(N, Tq, nhead, hd)
    kh = k.reshape(N, Tk, nhead, hd)
    vh = v.reshape(N, Tk, nhead, hd)
    s = jnp.einsum("nthd,nshd->nhts", qh, kh, precision=hi) + bias[:, None]
    p = jax.nn.softmax(s, axis=-1)
    o = jnp.einsum("nhts,nshd->nthd", p, vh, precision=hi).reshape(N, Tq, D)
    return jnp.einsum("nte,de->ntd", o, ow, precision=hi) + ob[0]


def ref_forward(tgt_tnd, mem_tnd, layer_params, final_ln, nhead, tgt_mask):
    hi = jax.lax.Precision.HIGHEST
    x = jnp.transpose(tgt_tnd, (1, 0, 2))
    mem = jnp.transpose(mem_tnd, (1, 0, 2))
    N, Tt, D = x.shape
    Ts = mem.shape[1]
    sbias = jnp.broadcast_to(tgt_mask[None], (N, Tt, Tt))
    mbias = jnp.zeros((N, Tt, Ts), jnp.float32)
    for p in layer_params:
        t2 = _ref_ln(x, p["ln1_w"], p["ln1_b"])
        x = x + _ref_mha(t2, t2, p["sa_in_w"], p["sa_in_b"], p["sa_out_w"],
                         p["sa_out_b"], sbias, nhead)
        t2 = _ref_ln(x, p["ln2_w"], p["ln2_b"])
        x = x + _ref_mha(t2, mem, p["ca_in_w"], p["ca_in_b"], p["ca_out_w"],
                         p["ca_out_b"], mbias, nhead)
        t2 = _ref_ln(x, p["ln3_w"], p["ln3_b"])
        h = jnp.maximum(jnp.einsum("ntd,fd->ntf", t2, p["ff_w1"], precision=hi)
                        + p["ff_b1"][0], 0.0)
        x = x + jnp.einsum("ntf,df->ntd", h, p["ff_w2"], precision=hi) + p["ff_b2"][0]
    x = _ref_ln(x, final_ln["w"], final_ln["b"])
    return jnp.transpose(x, (1, 0, 2))


# ----------------------------------------------------------------------------
if __name__ == "__main__":
    D_MODEL = 32
    NHEAD = 4
    NUM_LAYERS = 2
    DIM_FF = 64
    T_TGT, T_SRC, N = 8, 16, 2

    key = jax.random.PRNGKey(0)
    k_tgt, k_mem, k_par = jax.random.split(key, 3)

    tgt = jax.random.normal(k_tgt, (T_TGT, N, D_MODEL), jnp.float32)
    memory = jax.random.normal(k_mem, (T_SRC, N, D_MODEL), jnp.float32)

    # causal self-attention mask (additive float; NEG_INF on strictly-upper part)
    causal = jnp.where(
        jnp.arange(T_TGT)[:, None] >= jnp.arange(T_TGT)[None, :], 0.0, NEG_INF
    ).astype(jnp.float32)

    layer_params, final_ln = init_params(k_par, D_MODEL, NHEAD, NUM_LAYERS, DIM_FF)
    packed = pack_params(layer_params, final_ln, param_dtype=jnp.bfloat16)

    out = transformer_decoder_forward(tgt, memory, packed, NHEAD, tgt_mask=causal)
    out = jax.block_until_ready(out)

    # Reference uses the same bf16-rounded weights / bf16-rounded memory the kernel
    # sees, but f32 math throughout.
    ref_layers = [round_weights(p, jnp.bfloat16) for p in layer_params]
    mem_rounded = memory.astype(jnp.bfloat16).astype(jnp.float32)
    ref = jax.block_until_ready(
        ref_forward(tgt, mem_rounded, ref_layers, final_ln, NHEAD, causal)
    )

    assert out.shape == (T_TGT, N, D_MODEL)
    assert bool(jnp.all(jnp.isfinite(out)))
    max_err = float(jnp.max(jnp.abs(out - ref)))
    assert bool(jnp.allclose(out, ref, atol=2e-2, rtol=2e-2)), max_err
    print("KERNEL_OK")
</pallas_src>

<mosaic_0001>
module attributes {stable_mosaic.version = 11 : i64} {
  func.func @decoder_kernel(%arg0: i32, %arg1: i32, %arg2: memref<2x8x32xf32, #tpu.memory_space<vmem>>, %arg3: memref<2x16x32xbf16, #tpu.memory_space<vmem>>, %arg4: memref<8x8xf32, #tpu.memory_space<vmem>>, %arg5: memref<1x32x96xbf16, #tpu.memory_space<vmem>>, %arg6: memref<1x32x32xbf16, #tpu.memory_space<vmem>>, %arg7: memref<1x32x32xbf16, #tpu.memory_space<vmem>>, %arg8: memref<1x32x64xbf16, #tpu.memory_space<vmem>>, %arg9: memref<1x32x32xbf16, #tpu.memory_space<vmem>>, %arg10: memref<1x32x64xbf16, #tpu.memory_space<vmem>>, %arg11: memref<1x64x32xbf16, #tpu.memory_space<vmem>>, %arg12: memref<1x16x32xf32, #tpu.memory_space<vmem>>, %arg13: memref<1x1x64xf32, #tpu.memory_space<vmem>>, %arg14: memref<1x32xf32, #tpu.memory_space<vmem>>, %arg15: memref<1x32xf32, #tpu.memory_space<vmem>>, %arg16: memref<2x8x32xf32, #tpu.memory_space<vmem>>, %arg17: memref<2x8x32xf32, #tpu.memory_space<vmem>>) attributes {dimension_semantics = [#tpu.dimension_semantics<parallel>, #tpu.dimension_semantics<arbitrary>], iteration_bounds = array<i64: 1, 2>, scalar_prefetch = 0 : i64, scratch_operands = 1 : i64, tpu.core_type = #tpu.core_type<tc>, window_params = [{transform_indices = @transform_0, window_bounds = array<i64: 2, 8, 32>}, {transform_indices = @transform_1, window_bounds = array<i64: 2, 16, 32>}, {pipeline_mode = #tpu.pipeline_mode<synchronous>, transform_indices = @transform_2, window_bounds = array<i64: 8, 8>}, {transform_indices = @transform_3, window_bounds = array<i64: 1, 32, 96>}, {transform_indices = @transform_4, window_bounds = array<i64: 1, 32, 32>}, {transform_indices = @transform_5, window_bounds = array<i64: 1, 32, 32>}, {transform_indices = @transform_6, window_bounds = array<i64: 1, 32, 64>}, {transform_indices = @transform_7, window_bounds = array<i64: 1, 32, 32>}, {transform_indices = @transform_8, window_bounds = array<i64: 1, 32, 64>}, {transform_indices = @transform_9, window_bounds = array<i64: 1, 64, 32>}, {transform_indices = @transform_10, window_bounds = array<i64: 1, 16, 32>}, {transform_indices = @transform_11, window_bounds = array<i64: 1, 1, 64>}, {pipeline_mode = #tpu.pipeline_mode<synchronous>, transform_indices = @transform_12, window_bounds = array<i64: 1, 32>}, {pipeline_mode = #tpu.pipeline_mode<synchronous>, transform_indices = @transform_13, window_bounds = array<i64: 1, 32>}, {transform_indices = @transform_14, window_bounds = array<i64: 2, 8, 32>}]} {
    %c0_i32 = arith.constant 0 : i32
    %0 = arith.cmpi eq, %arg1, %c0_i32 : i32
    %1 = arith.extui %0 : i1 to i32
    %c0_i32_0 = arith.constant 0 : i32
    %2 = arith.cmpi ne, %1, %c0_i32_0 : i32
    scf.if %2 {
      %c0_101 = arith.constant 0 : index
      %c0_102 = arith.constant 0 : index
      %c0_103 = arith.constant 0 : index
      %355 = vector.load %arg2[%c0_101, %c0_102, %c0_103] : memref<2x8x32xf32, #tpu.memory_space<vmem>>, vector<2x8x32xf32>
      %c0_104 = arith.constant 0 : index
      %c0_105 = arith.constant 0 : index
      %c0_106 = arith.constant 0 : index
      %356 = vector.load %arg17[%c0_104, %c0_105, %c0_106] : memref<2x8x32xf32, #tpu.memory_space<vmem>>, vector<2x8x32xf32>
      tpu.vector_store %arg17[%c0_104, %c0_105, %c0_106], %355 {strides = array<i32>} : memref<2x8x32xf32, #tpu.memory_space<vmem>>, vector<2x8x32xf32>,
    } else {
    }
    %c0 = arith.constant 0 : index
    %c0_1 = arith.constant 0 : index
    %c0_2 = arith.constant 0 : index
    %3 = vector.load %arg17[%c0, %c0_1, %c0_2] : memref<2x8x32xf32, #tpu.memory_space<vmem>>, vector<2x8x32xf32>
    %c0_3 = arith.constant 0 : index
    %c0_4 = arith.constant 0 : index
    %c0_5 = arith.constant 0 : index
    %4 = vector.load %arg3[%c0_3, %c0_4, %c0_5] : memref<2x16x32xbf16, #tpu.memory_space<vmem>>, vector<2x16x32xbf16>
    %c0_6 = arith.constant 0 : index
    %c0_7 = arith.constant 0 : index
    %5 = vector.load %arg4[%c0_6, %c0_7] : memref<8x8xf32, #tpu.memory_space<vmem>>, vector<8x8xf32>
    %c0_8 = arith.constant 0 : index
    %c0_9 = arith.constant 0 : index
    %c0_10 = arith.constant 0 : index
    %6 = vector.load %arg12[%c0_8, %c0_9, %c0_10] : memref<1x16x32xf32, #tpu.memory_space<vmem>>, vector<1x16x32xf32>
    %7 = vector.shape_cast %6 : vector<1x16x32xf32> to vector<16x32xf32>
    %c0_11 = arith.constant 0 : index
    %c0_12 = arith.constant 0 : index
    %c0_13 = arith.constant 0 : index
    %8 = vector.load %arg13[%c0_11, %c0_12, %c0_13] : memref<1x1x64xf32, #tpu.memory_space<vmem>>, vector<1x1x64xf32>
    %9 = vector.shape_cast %8 : vector<1x1x64xf32> to vector<1x64xf32>
    %10 = vector.extract_strided_slice %7 {offsets = [0, 0], sizes = [1, 32], strides = [1, 1]} : vector<16x32xf32> to vector<1x32xf32>
    %11 = vector.extract_strided_slice %7 {offsets = [1, 0], sizes = [1, 32], strides = [1, 1]} : vector<16x32xf32> to vector<1x32xf32>
    %cst = arith.constant dense<0.000000e+00> : vector<2x8xf32>
    %12 = vector.multi_reduction <add>, %3, %cst [2] : vector<2x8x32xf32> to vector<2x8xf32>
    %13 = vector.shape_cast %12 : vector<2x8xf32> to vector<2x8x1xf32>
    %cst_14 = arith.constant 3.200000e+01 : f32
    %14 = vector.broadcast %cst_14 : f32 to vector<2x8x1xf32>
    %15 = arith.divf %13, %14 : vector<2x8x1xf32>
    %16 = vector.broadcast %15 : vector<2x8x1xf32> to vector<2x8x32xf32>
    %17 = arith.subf %3, %16 : vector<2x8x32xf32>
    %18 = arith.mulf %17, %17 : vector<2x8x32xf32>
    %cst_15 = arith.constant dense<0.000000e+00> : vector<2x8xf32>
    %19 = vector.multi_reduction <add>, %18, %cst_15 [2] : vector<2x8x32xf32> to vector<2x8xf32>
    %20 = vector.shape_cast %19 : vector<2x8xf32> to vector<2x8x1xf32>
    %cst_16 = arith.constant 3.200000e+01 : f32
    %21 = vector.broadcast %cst_16 : f32 to vector<2x8x1xf32>
    %22 = arith.divf %20, %21 : vector<2x8x1xf32>
    %23 = vector.broadcast %15 : vector<2x8x1xf32> to vector<2x8x32xf32>
    %24 = arith.subf %3, %23 : vector<2x8x32xf32>
    %cst_17 = arith.constant 9.99999974E-6 : f32
    %25 = vector.broadcast %cst_17 : f32 to vector<2x8x1xf32>
    %26 = arith.addf %22, %25 : vector<2x8x1xf32>
    %27 = math.rsqrt %26 : vector<2x8x1xf32>
    %28 = vector.broadcast %27 : vector<2x8x1xf32> to vector<2x8x32xf32>
    %29 = arith.mulf %24, %28 : vector<2x8x32xf32>
    %30 = vector.shape_cast %10 : vector<1x32xf32> to vector<1x1x32xf32>
    %31 = vector.broadcast %30 : vector<1x1x32xf32> to vector<2x8x32xf32>
    %32 = arith.mulf %29, %31 : vector<2x8x32xf32>
    %33 = vector.shape_cast %11 : vector<1x32xf32> to vector<1x1x32xf32>
    %34 = vector.broadcast %33 : vector<1x1x32xf32> to vector<2x8x32xf32>
    %35 = arith.addf %32, %34 : vector<2x8x32xf32>
    %36 = vector.shape_cast %35 : vector<2x8x32xf32> to vector<16x32xf32>
    %37 = arith.truncf %36 : vector<16x32xf32> to vector<16x32xbf16>
    %c0_18 = arith.constant 0 : index
    %c0_19 = arith.constant 0 : index
    %c0_20 = arith.constant 0 : index
    %38 = vector.load %arg5[%c0_18, %c0_19, %c0_20] : memref<1x32x96xbf16, #tpu.memory_space<vmem>>, vector<1x32x96xbf16>
    %39 = vector.shape_cast %38 : vector<1x32x96xbf16> to vector<32x96xbf16>
    %cst_21 = arith.constant dense<0.000000e+00> : vector<16x96xf32>
    %40 = tpu.matmul %37, %39, %cst_21 {dimension_numbers = #tpu.dot_dimension_numbers<[1], [0], [0], [1], [0, 0, 1, 1], [], []>} : vector<16x32xbf16>, vector<32x96xbf16>, vector<16x96xf32> -> vector<16x96xf32>
    %41 = vector.extract_strided_slice %40 {offsets = [0, 0], sizes = [16, 32], strides = [1, 1]} : vector<16x96xf32> to vector<16x32xf32>
    %42 = vector.extract_strided_slice %7 {offsets = [6, 0], sizes = [1, 32], strides = [1, 1]} : vector<16x32xf32> to vector<1x32xf32>
    %43 = vector.broadcast %42 : vector<1x32xf32> to vector<16x32xf32>
    %44 = arith.addf %41, %43 : vector<16x32xf32>
    %45 = arith.truncf %44 : vector<16x32xf32> to vector<16x32xbf16>
    %46 = vector.extract_strided_slice %40 {offsets = [0, 32], sizes = [16, 32], strides = [1, 1]} : vector<16x96xf32> to vector<16x32xf32>
    %47 = vector.extract_strided_slice %7 {offsets = [7, 0], sizes = [1, 32], strides = [1, 1]} : vector<16x32xf32> to vector<1x32xf32>
    %48 = vector.broadcast %47 : vector<1x32xf32> to vector<16x32xf32>
    %49 = arith.addf %46, %48 : vector<16x32xf32>
    %50 = arith.truncf %49 : vector<16x32xf32> to vector<16x32xbf16>
    %51 = vector.extract_strided_slice %40 {offsets = [0, 64], sizes = [16, 32], strides = [1, 1]} : vector<16x96xf32> to vector<16x32xf32>
    %52 = vector.extract_strided_slice %7 {offsets = [8, 0], sizes = [1, 32], strides = [1, 1]} : vector<16x32xf32> to vector<1x32xf32>
    %53 = vector.broadcast %52 : vector<1x32xf32> to vector<16x32xf32>
    %54 = arith.addf %51, %53 : vector<16x32xf32>
    %55 = arith.truncf %54 : vector<16x32xf32> to vector<16x32xbf16>
    %c0_22 = arith.constant 0 : index
    %c0_23 = arith.constant 0 : index
    %c0_24 = arith.constant 0 : index
    %56 = vector.load %arg6[%c0_22, %c0_23, %c0_24] : memref<1x32x32xbf16, #tpu.memory_space<vmem>>, vector<1x32x32xbf16>
    %57 = vector.shape_cast %56 : vector<1x32x32xbf16> to vector<32x32xbf16>
    %58 = vector.extract_strided_slice %7 {offsets = [9, 0], sizes = [1, 32], strides = [1, 1]} : vector<16x32xf32> to vector<1x32xf32>
    %59 = vector.extract_strided_slice %45 {offsets = [0, 0], sizes = [16, 8], strides = [1, 1]} : vector<16x32xbf16> to vector<16x8xbf16>
    %60 = vector.shape_cast %59 : vector<16x8xbf16> to vector<2x8x8xbf16>
    %61 = vector.extract_strided_slice %50 {offsets = [0, 0], sizes = [16, 8], strides = [1, 1]} : vector<16x32xbf16> to vector<16x8xbf16>
    %62 = vector.shape_cast %61 : vector<16x8xbf16> to vector<2x8x8xbf16>
    %63 = vector.extract_strided_slice %55 {offsets = [0, 0], sizes = [16, 8], strides = [1, 1]} : vector<16x32xbf16> to vector<16x8xbf16>
    %64 = vector.shape_cast %63 : vector<16x8xbf16> to vector<2x8x8xbf16>
    "tpu.trace_start"() <{level = 10 : i32, message = "bqd,bkd->bqk"}> : () -> ()
    %cst_25 = arith.constant dense<0.000000e+00> : vector<2x8x8xf32>
    %65 = tpu.matmul %60, %62, %cst_25 {dimension_numbers = #tpu.dot_dimension_numbers<[2], [2], [1], [1], [0, 0, 0, 1, 1, 1], [0], [0]>} : vector<2x8x8xbf16>, vector<2x8x8xbf16>, vector<2x8x8xf32> -> vector<2x8x8xf32>
    "tpu.trace_stop"() : () -> ()
    %cst_26 = arith.constant 0.353553385 : f32
    %66 = vector.broadcast %cst_26 : f32 to vector<2x8x8xf32>
    %67 = arith.mulf %65, %66 : vector<2x8x8xf32>
    %68 = vector.shape_cast %5 : vector<8x8xf32> to vector<1x8x8xf32>
    %69 = vector.broadcast %68 : vector<1x8x8xf32> to vector<2x8x8xf32>
    %70 = arith.addf %67, %69 : vector<2x8x8xf32>
    %cst_27 = arith.constant dense<0xFF800000> : vector<2x8xf32>
    %71 = vector.multi_reduction <maximumf>, %70, %cst_27 [2] : vector<2x8x8xf32> to vector<2x8xf32>
    %72 = vector.shape_cast %71 : vector<2x8xf32> to vector<2x8x1xf32>
    %73 = vector.broadcast %72 : vector<2x8x1xf32> to vector<2x8x8xf32>
    %74 = arith.subf %70, %73 : vector<2x8x8xf32>
    %75 = math.exp %74 : vector<2x8x8xf32>
    %cst_28 = arith.constant dense<0.000000e+00> : vector<2x8xf32>
    %76 = vector.multi_reduction <add>, %75, %cst_28 [2] : vector<2x8x8xf32> to vector<2x8xf32>
    %77 = vector.shape_cast %76 : vector<2x8xf32> to vector<2x8x1xf32>
    %78 = tpu.reciprocal %77 {approx = true} : vector<2x8x1xf32> -> vector<2x8x1xf32>
    %79 = vector.broadcast %78 : vector<2x8x1xf32> to vector<2x8x8xf32>
    %80 = arith.mulf %75, %79 : vector<2x8x8xf32>
    %81 = arith.truncf %80 : vector<2x8x8xf32> to vector<2x8x8xbf16>
    "tpu.trace_start"() <{level = 10 : i32, message = "bqk,bkd->bqd"}> : () -> ()
    %cst_29 = arith.constant dense<0.000000e+00> : vector<2x8x8xf32>
    %82 = tpu.matmul %81, %64, %cst_29 {dimension_numbers = #tpu.dot_dimension_numbers<[2], [1], [1], [2], [0, 0, 0, 1, 1, 2], [0], [0]>} : vector<2x8x8xbf16>, vector<2x8x8xbf16>, vector<2x8x8xf32> -> vector<2x8x8xf32>
    "tpu.trace_stop"() : () -> ()
    %83 = vector.extract_strided_slice %45 {offsets = [0, 8], sizes = [16, 8], strides = [1, 1]} : vector<16x32xbf16> to vector<16x8xbf16>
    %84 = vector.shape_cast %83 : vector<16x8xbf16> to vector<2x8x8xbf16>
    %85 = vector.extract_strided_slice %50 {offsets = [0, 8], sizes = [16, 8], strides = [1, 1]} : vector<16x32xbf16> to vector<16x8xbf16>
    %86 = vector.shape_cast %85 : vector<16x8xbf16> to vector<2x8x8xbf16>
    %87 = vector.extract_strided_slice %55 {offsets = [0, 8], sizes = [16, 8], strides = [1, 1]} : vector<16x32xbf16> to vector<16x8xbf16>
    %88 = vector.shape_cast %87 : vector<16x8xbf16> to vector<2x8x8xbf16>
    "tpu.trace_start"() <{level = 10 : i32, message = "bqd,bkd->bqk"}> : () -> ()
    %cst_30 = arith.constant dense<0.000000e+00> : vector<2x8x8xf32>
    %89 = tpu.matmul %84, %86, %cst_30 {dimension_numbers = #tpu.dot_dimension_numbers<[2], [2], [1], [1], [0, 0, 0, 1, 1, 1], [0], [0]>} : vector<2x8x8xbf16>, vector<2x8x8xbf16>, vector<2x8x8xf32> -> vector<2x8x8xf32>
    "tpu.trace_stop"() : () -> ()
    %cst_31 = arith.constant 0.353553385 : f32
    %90 = vector.broadcast %cst_31 : f32 to vector<2x8x8xf32>
    %91 = arith.mulf %89, %90 : vector<2x8x8xf32>
    %92 = vector.shape_cast %5 : vector<8x8xf32> to vector<1x8x8xf32>
    %93 = vector.broadcast %92 : vector<1x8x8xf32> to vector<2x8x8xf32>
    %94 = arith.addf %91, %93 : vector<2x8x8xf32>
    %cst_32 = arith.constant dense<0xFF800000> : vector<2x8xf32>
    %95 = vector.multi_reduction <maximumf>, %94, %cst_32 [2] : vector<2x8x8xf32> to vector<2x8xf32>
    %96 = vector.shape_cast %95 : vector<2x8xf32> to vector<2x8x1xf32>
    %97 = vector.broadcast %96 : vector<2x8x1xf32> to vector<2x8x8xf32>
    %98 = arith.subf %94, %97 : vector<2x8x8xf32>
    %99 = math.exp %98 : vector<2x8x8xf32>
    %cst_33 = arith.constant dense<0.000000e+00> : vector<2x8xf32>
    %100 = vector.multi_reduction <add>, %99, %cst_33 [2] : vector<2x8x8xf32> to vector<2x8xf32>
    %101 = vector.shape_cast %100 : vector<2x8xf32> to vector<2x8x1xf32>
    %102 = tpu.reciprocal %101 {approx = true} : vector<2x8x1xf32> -> vector<2x8x1xf32>
    %103 = vector.broadcast %102 : vector<2x8x1xf32> to vector<2x8x8xf32>
    %104 = arith.mulf %99, %103 : vector<2x8x8xf32>
    %105 = arith.truncf %104 : vector<2x8x8xf32> to vector<2x8x8xbf16>
    "tpu.trace_start"() <{level = 10 : i32, message = "bqk,bkd->bqd"}> : () -> ()
    %cst_34 = arith.constant dense<0.000000e+00> : vector<2x8x8xf32>
    %106 = tpu.matmul %105, %88, %cst_34 {dimension_numbers = #tpu.dot_dimension_numbers<[2], [1], [1], [2], [0, 0, 0, 1, 1, 2], [0], [0]>} : vector<2x8x8xbf16>, vector<2x8x8xbf16>, vector<2x8x8xf32> -> vector<2x8x8xf32>
    "tpu.trace_stop"() : () -> ()
    %107 = vector.extract_strided_slice %45 {offsets = [0, 16], sizes = [16, 8], strides = [1, 1]} : vector<16x32xbf16> to vector<16x8xbf16>
    %108 = vector.shape_cast %107 : vector<16x8xbf16> to vector<2x8x8xbf16>
    %109 = vector.extract_strided_slice %50 {offsets = [0, 16], sizes = [16, 8], strides = [1, 1]} : vector<16x32xbf16> to vector<16x8xbf16>
    %110 = vector.shape_cast %109 : vector<16x8xbf16> to vector<2x8x8xbf16>
    %111 = vector.extract_strided_slice %55 {offsets = [0, 16], sizes = [16, 8], strides = [1, 1]} : vector<16x32xbf16> to vector<16x8xbf16>
    %112 = vector.shape_cast %111 : vector<16x8xbf16> to vector<2x8x8xbf16>
    "tpu.trace_start"() <{level = 10 : i32, message = "bqd,bkd->bqk"}> : () -> ()
    %cst_35 = arith.constant dense<0.000000e+00> : vector<2x8x8xf32>
    %113 = tpu.matmul %108, %110, %cst_35 {dimension_numbers = #tpu.dot_dimension_numbers<[2], [2], [1], [1], [0, 0, 0, 1, 1, 1], [0], [0]>} : vector<2x8x8xbf16>, vector<2x8x8xbf16>, vector<2x8x8xf32> -> vector<2x8x8xf32>
    "tpu.trace_stop"() : () -> ()
    %cst_36 = arith.constant 0.353553385 : f32
    %114 = vector.broadcast %cst_36 : f32 to vector<2x8x8xf32>
    %115 = arith.mulf %113, %114 : vector<2x8x8xf32>
    %116 = vector.shape_cast %5 : vector<8x8xf32> to vector<1x8x8xf32>
    %117 = vector.broadcast %116 : vector<1x8x8xf32> to vector<2x8x8xf32>
    %118 = arith.addf %115, %117 : vector<2x8x8xf32>
    %cst_37 = arith.constant dense<0xFF800000> : vector<2x8xf32>
    %119 = vector.multi_reduction <maximumf>, %118, %cst_37 [2] : vector<2x8x8xf32> to vector<2x8xf32>
    %120 = vector.shape_cast %119 : vector<2x8xf32> to vector<2x8x1xf32>
    %121 = vector.broadcast %120 : vector<2x8x1xf32> to vector<2x8x8xf32>
    %122 = arith.subf %118, %121 : vector<2x8x8xf32>
    %123 = math.exp %122 : vector<2x8x8xf32>
    %cst_38 = arith.constant dense<0.000000e+00> : vector<2x8xf32>
    %124 = vector.multi_reduction <add>, %123, %cst_38 [2] : vector<2x8x8xf32> to vector<2x8xf32>
    %125 = vector.shape_cast %124 : vector<2x8xf32> to vector<2x8x1xf32>
    %126 = tpu.reciprocal %125 {approx = true} : vector<2x8x1xf32> -> vector<2x8x1xf32>
    %127 = vector.broadcast %126 : vector<2x8x1xf32> to vector<2x8x8xf32>
    %128 = arith.mulf %123, %127 : vector<2x8x8xf32>
    %129 = arith.truncf %128 : vector<2x8x8xf32> to vector<2x8x8xbf16>
    "tpu.trace_start"() <{level = 10 : i32, message = "bqk,bkd->bqd"}> : () -> ()
    %cst_39 = arith.constant dense<0.000000e+00> : vector<2x8x8xf32>
    %130 = tpu.matmul %129, %112, %cst_39 {dimension_numbers = #tpu.dot_dimension_numbers<[2], [1], [1], [2], [0, 0, 0, 1, 1, 2], [0], [0]>} : vector<2x8x8xbf16>, vector<2x8x8xbf16>, vector<2x8x8xf32> -> vector<2x8x8xf32>
    "tpu.trace_stop"() : () -> ()
    %131 = vector.extract_strided_slice %45 {offsets = [0, 24], sizes = [16, 8], strides = [1, 1]} : vector<16x32xbf16> to vector<16x8xbf16>
    %132 = vector.shape_cast %131 : vector<16x8xbf16> to vector<2x8x8xbf16>
    %133 = vector.extract_strided_slice %50 {offsets = [0, 24], sizes = [16, 8], strides = [1, 1]} : vector<16x32xbf16> to vector<16x8xbf16>
    %134 = vector.shape_cast %133 : vector<16x8xbf16> to vector<2x8x8xbf16>
    %135 = vector.extract_strided_slice %55 {offsets = [0, 24], sizes = [16, 8], strides = [1, 1]} : vector<16x32xbf16> to vector<16x8xbf16>
    %136 = vector.shape_cast %135 : vector<16x8xbf16> to vector<2x8x8xbf16>
    "tpu.trace_start"() <{level = 10 : i32, message = "bqd,bkd->bqk"}> : () -> ()
    %cst_40 = arith.constant dense<0.000000e+00> : vector<2x8x8xf32>
    %137 = tpu.matmul %132, %134, %cst_40 {dimension_numbers = #tpu.dot_dimension_numbers<[2], [2], [1], [1], [0, 0, 0, 1, 1, 1], [0], [0]>} : vector<2x8x8xbf16>, vector<2x8x8xbf16>, vector<2x8x8xf32> -> vector<2x8x8xf32>
    "tpu.trace_stop"() : () -> ()
    %cst_41 = arith.constant 0.353553385 : f32
    %138 = vector.broadcast %cst_41 : f32 to vector<2x8x8xf32>
    %139 = arith.mulf %137, %138 : vector<2x8x8xf32>
    %140 = vector.shape_cast %5 : vector<8x8xf32> to vector<1x8x8xf32>
    %141 = vector.broadcast %140 : vector<1x8x8xf32> to vector<2x8x8xf32>
    %142 = arith.addf %139, %141 : vector<2x8x8xf32>
    %cst_42 = arith.constant dense<0xFF800000> : vector<2x8xf32>
    %143 = vector.multi_reduction <maximumf>, %142, %cst_42 [2] : vector<2x8x8xf32> to vector<2x8xf32>
    %144 = vector.shape_cast %143 : vector<2x8xf32> to vector<2x8x1xf32>
    %145 = vector.broadcast %144 : vector<2x8x1xf32> to vector<2x8x8xf32>
    %146 = arith.subf %142, %145 : vector<2x8x8xf32>
    %147 = math.exp %146 : vector<2x8x8xf32>
    %cst_43 = arith.constant dense<0.000000e+00> : vector<2x8xf32>
    %148 = vector.multi_reduction <add>, %147, %cst_43 [2] : vector<2x8x8xf32> to vector<2x8xf32>
    %149 = vector.shape_cast %148 : vector<2x8xf32> to vector<2x8x1xf32>
    %150 = tpu.reciprocal %149 {approx = true} : vector<2x8x1xf32> -> vector<2x8x1xf32>
    %151 = vector.broadcast %150 : vector<2x8x1xf32> to vector<2x8x8xf32>
    %152 = arith.mulf %147, %151 : vector<2x8x8xf32>
    %153 = arith.truncf %152 : vector<2x8x8xf32> to vector<2x8x8xbf16>
    "tpu.trace_start"() <{level = 10 : i32, message = "bqk,bkd->bqd"}> : () -> ()
    %cst_44 = arith.constant dense<0.000000e+00> : vector<2x8x8xf32>
    %154 = tpu.matmul %153, %136, %cst_44 {dimension_numbers = #tpu.dot_dimension_numbers<[2], [1], [1], [2], [0, 0, 0, 1, 1, 2], [0], [0]>} : vector<2x8x8xbf16>, vector<2x8x8xbf16>, vector<2x8x8xf32> -> vector<2x8x8xf32>
    "tpu.trace_stop"() : () -> ()
    %155 = tpu.concatenate %82, %106, %130, %154 in 2 : vector<2x8x8xf32>, vector<2x8x8xf32>, vector<2x8x8xf32>, vector<2x8x8xf32> -> vector<2x8x32xf32>
    %156 = vector.shape_cast %155 : vector<2x8x32xf32> to vector<16x32xf32>
    %157 = arith.truncf %156 : vector<16x32xf32> to vector<16x32xbf16>
    %cst_45 = arith.constant dense<0.000000e+00> : vector<16x32xf32>
    %158 = tpu.matmul %157, %57, %cst_45 {dimension_numbers = #tpu.dot_dimension_numbers<[1], [0], [0], [1], [0, 0, 1, 1], [], []>} : vector<16x32xbf16>, vector<32x32xbf16>, vector<16x32xf32> -> vector<16x32xf32>
    %159 = vector.broadcast %58 : vector<1x32xf32> to vector<16x32xf32>
    %160 = arith.addf %158, %159 : vector<16x32xf32>
    %161 = vector.shape_cast %160 : vector<16x32xf32> to vector<2x8x32xf32>
    %162 = arith.addf %3, %161 : vector<2x8x32xf32>
    %163 = vector.extract_strided_slice %7 {offsets = [2, 0], sizes = [1, 32], strides = [1, 1]} : vector<16x32xf32> to vector<1x32xf32>
    %164 = vector.extract_strided_slice %7 {offsets = [3, 0], sizes = [1, 32], strides = [1, 1]} : vector<16x32xf32> to vector<1x32xf32>
    %cst_46 = arith.constant dense<0.000000e+00> : vector<2x8xf32>
    %165 = vector.multi_reduction <add>, %162, %cst_46 [2] : vector<2x8x32xf32> to vector<2x8xf32>
    %166 = vector.shape_cast %165 : vector<2x8xf32> to vector<2x8x1xf32>
    %cst_47 = arith.constant 3.200000e+01 : f32
    %167 = vector.broadcast %cst_47 : f32 to vector<2x8x1xf32>
    %168 = arith.divf %166, %167 : vector<2x8x1xf32>
    %169 = vector.broadcast %168 : vector<2x8x1xf32> to vector<2x8x32xf32>
    %170 = arith.subf %162, %169 : vector<2x8x32xf32>
    %171 = arith.mulf %170, %170 : vector<2x8x32xf32>
    %cst_48 = arith.constant dense<0.000000e+00> : vector<2x8xf32>
    %172 = vector.multi_reduction <add>, %171, %cst_48 [2] : vector<2x8x32xf32> to vector<2x8xf32>
    %173 = vector.shape_cast %172 : vector<2x8xf32> to vector<2x8x1xf32>
    %cst_49 = arith.constant 3.200000e+01 : f32
    %174 = vector.broadcast %cst_49 : f32 to vector<2x8x1xf32>
    %175 = arith.divf %173, %174 : vector<2x8x1xf32>
    %176 = vector.broadcast %168 : vector<2x8x1xf32> to vector<2x8x32xf32>
    %177 = arith.subf %162, %176 : vector<2x8x32xf32>
    %cst_50 = arith.constant 9.99999974E-6 : f32
    %178 = vector.broadcast %cst_50 : f32 to vector<2x8x1xf32>
    %179 = arith.addf %175, %178 : vector<2x8x1xf32>
    %180 = math.rsqrt %179 : vector<2x8x1xf32>
    %181 = vector.broadcast %180 : vector<2x8x1xf32> to vector<2x8x32xf32>
    %182 = arith.mulf %177, %181 : vector<2x8x32xf32>
    %183 = vector.shape_cast %163 : vector<1x32xf32> to vector<1x1x32xf32>
    %184 = vector.broadcast %183 : vector<1x1x32xf32> to vector<2x8x32xf32>
    %185 = arith.mulf %182, %184 : vector<2x8x32xf32>
    %186 = vector.shape_cast %164 : vector<1x32xf32> to vector<1x1x32xf32>
    %187 = vector.broadcast %186 : vector<1x1x32xf32> to vector<2x8x32xf32>
    %188 = arith.addf %185, %187 : vector<2x8x32xf32>
    %189 = vector.shape_cast %188 : vector<2x8x32xf32> to vector<16x32xf32>
    %190 = arith.truncf %189 : vector<16x32xf32> to vector<16x32xbf16>
    %191 = vector.shape_cast %4 : vector<2x16x32xbf16> to vector<32x32xbf16>
    %c0_51 = arith.constant 0 : index
    %c0_52 = arith.constant 0 : index
    %c0_53 = arith.constant 0 : index
    %192 = vector.load %arg7[%c0_51, %c0_52, %c0_53] : memref<1x32x32xbf16, #tpu.memory_space<vmem>>, vector<1x32x32xbf16>
    %193 = vector.shape_cast %192 : vector<1x32x32xbf16> to vector<32x32xbf16>
    %cst_54 = arith.constant dense<0.000000e+00> : vector<16x32xf32>
    %194 = tpu.matmul %190, %193, %cst_54 {dimension_numbers = #tpu.dot_dimension_numbers<[1], [0], [0], [1], [0, 0, 1, 1], [], []>} : vector<16x32xbf16>, vector<32x32xbf16>, vector<16x32xf32> -> vector<16x32xf32>
    %195 = vector.extract_strided_slice %7 {offsets = [10, 0], sizes = [1, 32], strides = [1, 1]} : vector<16x32xf32> to vector<1x32xf32>
    %196 = vector.broadcast %195 : vector<1x32xf32> to vector<16x32xf32>
    %197 = arith.addf %194, %196 : vector<16x32xf32>
    %198 = arith.truncf %197 : vector<16x32xf32> to vector<16x32xbf16>
    %c0_55 = arith.constant 0 : index
    %c0_56 = arith.constant 0 : index
    %c0_57 = arith.constant 0 : index
    %199 = vector.load %arg8[%c0_55, %c0_56, %c0_57] : memref<1x32x64xbf16, #tpu.memory_space<vmem>>, vector<1x32x64xbf16>
    %200 = vector.shape_cast %199 : vector<1x32x64xbf16> to vector<32x64xbf16>
    %cst_58 = arith.constant dense<0.000000e+00> : vector<32x64xf32>
    %201 = tpu.matmul %191, %200, %cst_58 {dimension_numbers = #tpu.dot_dimension_numbers<[1], [0], [0], [1], [0, 0, 1, 1], [], []>} : vector<32x32xbf16>, vector<32x64xbf16>, vector<32x64xf32> -> vector<32x64xf32>
    %202 = vector.extract_strided_slice %201 {offsets = [0, 0], sizes = [32, 32], strides = [1, 1]} : vector<32x64xf32> to vector<32x32xf32>
    %203 = vector.extract_strided_slice %7 {offsets = [11, 0], sizes = [1, 32], strides = [1, 1]} : vector<16x32xf32> to vector<1x32xf32>
    %204 = vector.broadcast %203 : vector<1x32xf32> to vector<32x32xf32>
    %205 = arith.addf %202, %204 : vector<32x32xf32>
    %206 = arith.truncf %205 : vector<32x32xf32> to vector<32x32xbf16>
    %207 = vector.extract_strided_slice %201 {offsets = [0, 32], sizes = [32, 32], strides = [1, 1]} : vector<32x64xf32> to vector<32x32xf32>
    %208 = vector.extract_strided_slice %7 {offsets = [12, 0], sizes = [1, 32], strides = [1, 1]} : vector<16x32xf32> to vector<1x32xf32>
    %209 = vector.broadcast %208 : vector<1x32xf32> to vector<32x32xf32>
    %210 = arith.addf %207, %209 : vector<32x32xf32>
    %211 = arith.truncf %210 : vector<32x32xf32> to vector<32x32xbf16>
    %c0_59 = arith.constant 0 : index
    %c0_60 = arith.constant 0 : index
    %c0_61 = arith.constant 0 : index
    %212 = vector.load %arg9[%c0_59, %c0_60, %c0_61] : memref<1x32x32xbf16, #tpu.memory_space<vmem>>, vector<1x32x32xbf16>
    %213 = vector.shape_cast %212 : vector<1x32x32xbf16> to vector<32x32xbf16>
    %214 = vector.extract_strided_slice %7 {offsets = [13, 0], sizes = [1, 32], strides = [1, 1]} : vector<16x32xf32> to vector<1x32xf32>
    %215 = vector.extract_strided_slice %198 {offsets = [0, 0], sizes = [16, 8], strides = [1, 1]} : vector<16x32xbf16> to vector<16x8xbf16>
    %216 = vector.shape_cast %215 : vector<16x8xbf16> to vector<2x8x8xbf16>
    %217 = vector.extract_strided_slice %206 {offsets = [0, 0], sizes = [32, 8], strides = [1, 1]} : vector<32x32xbf16> to vector<32x8xbf16>
    %218 = vector.shape_cast %217 : vector<32x8xbf16> to vector<2x16x8xbf16>
    %219 = vector.extract_strided_slice %211 {offsets = [0, 0], sizes = [32, 8], strides = [1, 1]} : vector<32x32xbf16> to vector<32x8xbf16>
    %220 = vector.shape_cast %219 : vector<32x8xbf16> to vector<2x16x8xbf16>
    "tpu.trace_start"() <{level = 10 : i32, message = "bqd,bkd->bqk"}> : () -> ()
    %cst_62 = arith.constant dense<0.000000e+00> : vector<2x8x16xf32>
    %221 = tpu.matmul %216, %218, %cst_62 {dimension_numbers = #tpu.dot_dimension_numbers<[2], [2], [1], [1], [0, 0, 0, 1, 1, 1], [0], [0]>} : vector<2x8x8xbf16>, vector<2x16x8xbf16>, vector<2x8x16xf32> -> vector<2x8x16xf32>
    "tpu.trace_stop"() : () -> ()
    %cst_63 = arith.constant 0.353553385 : f32
    %222 = vector.broadcast %cst_63 : f32 to vector<2x8x16xf32>
    %223 = arith.mulf %221, %222 : vector<2x8x16xf32>
    %cst_64 = arith.constant dense<0xFF800000> : vector<2x8xf32>
    %224 = vector.multi_reduction <maximumf>, %223, %cst_64 [2] : vector<2x8x16xf32> to vector<2x8xf32>
    %225 = vector.shape_cast %224 : vector<2x8xf32> to vector<2x8x1xf32>
    %226 = vector.broadcast %225 : vector<2x8x1xf32> to vector<2x8x16xf32>
    %227 = arith.subf %223, %226 : vector<2x8x16xf32>
    %228 = math.exp %227 : vector<2x8x16xf32>
    %cst_65 = arith.constant dense<0.000000e+00> : vector<2x8xf32>
    %229 = vector.multi_reduction <add>, %228, %cst_65 [2] : vector<2x8x16xf32> to vector<2x8xf32>
    %230 = vector.shape_cast %229 : vector<2x8xf32> to vector<2x8x1xf32>
    %231 = tpu.reciprocal %230 {approx = true} : vector<2x8x1xf32> -> vector<2x8x1xf32>
    %232 = vector.broadcast %231 : vector<2x8x1xf32> to vector<2x8x16xf32>
    %233 = arith.mulf %228, %232 : vector<2x8x16xf32>
    %234 = arith.truncf %233 : vector<2x8x16xf32> to vector<2x8x16xbf16>
    "tpu.trace_start"() <{level = 10 : i32, message = "bqk,bkd->bqd"}> : () -> ()
    %cst_66 = arith.constant dense<0.000000e+00> : vector<2x8x8xf32>
    %235 = tpu.matmul %234, %220, %cst_66 {dimension_numbers = #tpu.dot_dimension_numbers<[2], [1], [1], [2], [0, 0, 0, 1, 1, 2], [0], [0]>} : vector<2x8x16xbf16>, vector<2x16x8xbf16>, vector<2x8x8xf32> -> vector<2x8x8xf32>
    "tpu.trace_stop"() : () -> ()
    %236 = vector.extract_strided_slice %198 {offsets = [0, 8], sizes = [16, 8], strides = [1, 1]} : vector<16x32xbf16> to vector<16x8xbf16>
    %237 = vector.shape_cast %236 : vector<16x8xbf16> to vector<2x8x8xbf16>
    %238 = vector.extract_strided_slice %206 {offsets = [0, 8], sizes = [32, 8], strides = [1, 1]} : vector<32x32xbf16> to vector<32x8xbf16>
    %239 = vector.shape_cast %238 : vector<32x8xbf16> to vector<2x16x8xbf16>
    %240 = vector.extract_strided_slice %211 {offsets = [0, 8], sizes = [32, 8], strides = [1, 1]} : vector<32x32xbf16> to vector<32x8xbf16>
    %241 = vector.shape_cast %240 : vector<32x8xbf16> to vector<2x16x8xbf16>
    "tpu.trace_start"() <{level = 10 : i32, message = "bqd,bkd->bqk"}> : () -> ()
    %cst_67 = arith.constant dense<0.000000e+00> : vector<2x8x16xf32>
    %242 = tpu.matmul %237, %239, %cst_67 {dimension_numbers = #tpu.dot_dimension_numbers<[2], [2], [1], [1], [0, 0, 0, 1, 1, 1], [0], [0]>} : vector<2x8x8xbf16>, vector<2x16x8xbf16>, vector<2x8x16xf32> -> vector<2x8x16xf32>
    "tpu.trace_stop"() : () -> ()
    %cst_68 = arith.constant 0.353553385 : f32
    %243 = vector.broadcast %cst_68 : f32 to vector<2x8x16xf32>
    %244 = arith.mulf %242, %243 : vector<2x8x16xf32>
    %cst_69 = arith.constant dense<0xFF800000> : vector<2x8xf32>
    %245 = vector.multi_reduction <maximumf>, %244, %cst_69 [2] : vector<2x8x16xf32> to vector<2x8xf32>
    %246 = vector.shape_cast %245 : vector<2x8xf32> to vector<2x8x1xf32>
    %247 = vector.broadcast %246 : vector<2x8x1xf32> to vector<2x8x16xf32>
    %248 = arith.subf %244, %247 : vector<2x8x16xf32>
    %249 = math.exp %248 : vector<2x8x16xf32>
    %cst_70 = arith.constant dense<0.000000e+00> : vector<2x8xf32>
    %250 = vector.multi_reduction <add>, %249, %cst_70 [2] : vector<2x8x16xf32> to vector<2x8xf32>
    %251 = vector.shape_cast %250 : vector<2x8xf32> to vector<2x8x1xf32>
    %252 = tpu.reciprocal %251 {approx = true} : vector<2x8x1xf32> -> vector<2x8x1xf32>
    %253 = vector.broadcast %252 : vector<2x8x1xf32> to vector<2x8x16xf32>
    %254 = arith.mulf %249, %253 : vector<2x8x16xf32>
    %255 = arith.truncf %254 : vector<2x8x16xf32> to vector<2x8x16xbf16>
    "tpu.trace_start"() <{level = 10 : i32, message = "bqk,bkd->bqd"}> : () -> ()
    %cst_71 = arith.constant dense<0.000000e+00> : vector<2x8x8xf32>
    %256 = tpu.matmul %255, %241, %cst_71 {dimension_numbers = #tpu.dot_dimension_numbers<[2], [1], [1], [2], [0, 0, 0, 1, 1, 2], [0], [0]>} : vector<2x8x16xbf16>, vector<2x16x8xbf16>, vector<2x8x8xf32> -> vector<2x8x8xf32>
    "tpu.trace_stop"() : () -> ()
    %257 = vector.extract_strided_slice %198 {offsets = [0, 16], sizes = [16, 8], strides = [1, 1]} : vector<16x32xbf16> to vector<16x8xbf16>
    %258 = vector.shape_cast %257 : vector<16x8xbf16> to vector<2x8x8xbf16>
    %259 = vector.extract_strided_slice %206 {offsets = [0, 16], sizes = [32, 8], strides = [1, 1]} : vector<32x32xbf16> to vector<32x8xbf16>
    %260 = vector.shape_cast %259 : vector<32x8xbf16> to vector<2x16x8xbf16>
    %261 = vector.extract_strided_slice %211 {offsets = [0, 16], sizes = [32, 8], strides = [1, 1]} : vector<32x32xbf16> to vector<32x8xbf16>
    %262 = vector.shape_cast %261 : vector<32x8xbf16> to vector<2x16x8xbf16>
    "tpu.trace_start"() <{level = 10 : i32, message = "bqd,bkd->bqk"}> : () -> ()
    %cst_72 = arith.constant dense<0.000000e+00> : vector<2x8x16xf32>
    %263 = tpu.matmul %258, %260, %cst_72 {dimension_numbers = #tpu.dot_dimension_numbers<[2], [2], [1], [1], [0, 0, 0, 1, 1, 1], [0], [0]>} : vector<2x8x8xbf16>, vector<2x16x8xbf16>, vector<2x8x16xf32> -> vector<2x8x16xf32>
    "tpu.trace_stop"() : () -> ()
    %cst_73 = arith.constant 0.353553385 : f32
    %264 = vector.broadcast %cst_73 : f32 to vector<2x8x16xf32>
    %265 = arith.mulf %263, %264 : vector<2x8x16xf32>
    %cst_74 = arith.constant dense<0xFF800000> : vector<2x8xf32>
    %266 = vector.multi_reduction <maximumf>, %265, %cst_74 [2] : vector<2x8x16xf32> to vector<2x8xf32>
    %267 = vector.shape_cast %266 : vector<2x8xf32> to vector<2x8x1xf32>
    %268 = vector.broadcast %267 : vector<2x8x1xf32> to vector<2x8x16xf32>
    %269 = arith.subf %265, %268 : vector<2x8x16xf32>
    %270 = math.exp %269 : vector<2x8x16xf32>
    %cst_75 = arith.constant dense<0.000000e+00> : vector<2x8xf32>
    %271 = vector.multi_reduction <add>, %270, %cst_75 [2] : vector<2x8x16xf32> to vector<2x8xf32>
    %272 = vector.shape_cast %271 : vector<2x8xf32> to vector<2x8x1xf32>
    %273 = tpu.reciprocal %272 {approx = true} : vector<2x8x1xf32> -> vector<2x8x1xf32>
    %274 = vector.broadcast %273 : vector<2x8x1xf32> to vector<2x8x16xf32>
    %275 = arith.mulf %270, %274 : vector<2x8x16xf32>
    %276 = arith.truncf %275 : vector<2x8x16xf32> to vector<2x8x16xbf16>
    "tpu.trace_start"() <{level = 10 : i32, message = "bqk,bkd->bqd"}> : () -> ()
    %cst_76 = arith.constant dense<0.000000e+00> : vector<2x8x8xf32>
    %277 = tpu.matmul %276, %262, %cst_76 {dimension_numbers = #tpu.dot_dimension_numbers<[2], [1], [1], [2], [0, 0, 0, 1, 1, 2], [0], [0]>} : vector<2x8x16xbf16>, vector<2x16x8xbf16>, vector<2x8x8xf32> -> vector<2x8x8xf32>
    "tpu.trace_stop"() : () -> ()
    %278 = vector.extract_strided_slice %198 {offsets = [0, 24], sizes = [16, 8], strides = [1, 1]} : vector<16x32xbf16> to vector<16x8xbf16>
    %279 = vector.shape_cast %278 : vector<16x8xbf16> to vector<2x8x8xbf16>
    %280 = vector.extract_strided_slice %206 {offsets = [0, 24], sizes = [32, 8], strides = [1, 1]} : vector<32x32xbf16> to vector<32x8xbf16>
    %281 = vector.shape_cast %280 : vector<32x8xbf16> to vector<2x16x8xbf16>
    %282 = vector.extract_strided_slice %211 {offsets = [0, 24], sizes = [32, 8], strides = [1, 1]} : vector<32x32xbf16> to vector<32x8xbf16>
    %283 = vector.shape_cast %282 : vector<32x8xbf16> to vector<2x16x8xbf16>
    "tpu.trace_start"() <{level = 10 : i32, message = "bqd,bkd->bqk"}> : () -> ()
    %cst_77 = arith.constant dense<0.000000e+00> : vector<2x8x16xf32>
    %284 = tpu.matmul %279, %281, %cst_77 {dimension_numbers = #tpu.dot_dimension_numbers<[2], [2], [1], [1], [0, 0, 0, 1, 1, 1], [0], [0]>} : vector<2x8x8xbf16>, vector<2x16x8xbf16>, vector<2x8x16xf32> -> vector<2x8x16xf32>
    "tpu.trace_stop"() : () -> ()
    %cst_78 = arith.constant 0.353553385 : f32
    %285 = vector.broadcast %cst_78 : f32 to vector<2x8x16xf32>
    %286 = arith.mulf %284, %285 : vector<2x8x16xf32>
    %cst_79 = arith.constant dense<0xFF800000> : vector<2x8xf32>
    %287 = vector.multi_reduction <maximumf>, %286, %cst_79 [2] : vector<2x8x16xf32> to vector<2x8xf32>
    %288 = vector.shape_cast %287 : vector<2x8xf32> to vector<2x8x1xf32>
    %289 = vector.broadcast %288 : vector<2x8x1xf32> to vector<2x8x16xf32>
    %290 = arith.subf %286, %289 : vector<2x8x16xf32>
    %291 = math.exp %290 : vector<2x8x16xf32>
    %cst_80 = arith.constant dense<0.000000e+00> : vector<2x8xf32>
    %292 = vector.multi_reduction <add>, %291, %cst_80 [2] : vector<2x8x16xf32> to vector<2x8xf32>
    %293 = vector.shape_cast %292 : vector<2x8xf32> to vector<2x8x1xf32>
    %294 = tpu.reciprocal %293 {approx = true} : vector<2x8x1xf32> -> vector<2x8x1xf32>
    %295 = vector.broadcast %294 : vector<2x8x1xf32> to vector<2x8x16xf32>
    %296 = arith.mulf %291, %295 : vector<2x8x16xf32>
    %297 = arith.truncf %296 : vector<2x8x16xf32> to vector<2x8x16xbf16>
    "tpu.trace_start"() <{level = 10 : i32, message = "bqk,bkd->bqd"}> : () -> ()
    %cst_81 = arith.constant dense<0.000000e+00> : vector<2x8x8xf32>
    %298 = tpu.matmul %297, %283, %cst_81 {dimension_numbers = #tpu.dot_dimension_numbers<[2], [1], [1], [2], [0, 0, 0, 1, 1, 2], [0], [0]>} : vector<2x8x16xbf16>, vector<2x16x8xbf16>, vector<2x8x8xf32> -> vector<2x8x8xf32>
    "tpu.trace_stop"() : () -> ()
    %299 = tpu.concatenate %235, %256, %277, %298 in 2 : vector<2x8x8xf32>, vector<2x8x8xf32>, vector<2x8x8xf32>, vector<2x8x8xf32> -> vector<2x8x32xf32>
    %300 = vector.shape_cast %299 : vector<2x8x32xf32> to vector<16x32xf32>
    %301 = arith.truncf %300 : vector<16x32xf32> to vector<16x32xbf16>
    %cst_82 = arith.constant dense<0.000000e+00> : vector<16x32xf32>
    %302 = tpu.matmul %301, %213, %cst_82 {dimension_numbers = #tpu.dot_dimension_numbers<[1], [0], [0], [1], [0, 0, 1, 1], [], []>} : vector<16x32xbf16>, vector<32x32xbf16>, vector<16x32xf32> -> vector<16x32xf32>
    %303 = vector.broadcast %214 : vector<1x32xf32> to vector<16x32xf32>
    %304 = arith.addf %302, %303 : vector<16x32xf32>
    %305 = vector.shape_cast %304 : vector<16x32xf32> to vector<2x8x32xf32>
    %306 = arith.addf %162, %305 : vector<2x8x32xf32>
    %307 = vector.extract_strided_slice %7 {offsets = [4, 0], sizes = [1, 32], strides = [1, 1]} : vector<16x32xf32> to vector<1x32xf32>
    %308 = vector.extract_strided_slice %7 {offsets = [5, 0], sizes = [1, 32], strides = [1, 1]} : vector<16x32xf32> to vector<1x32xf32>
    %cst_83 = arith.constant dense<0.000000e+00> : vector<2x8xf32>
    %309 = vector.multi_reduction <add>, %306, %cst_83 [2] : vector<2x8x32xf32> to vector<2x8xf32>
    %310 = vector.shape_cast %309 : vector<2x8xf32> to vector<2x8x1xf32>
    %cst_84 = arith.constant 3.200000e+01 : f32
    %311 = vector.broadcast %cst_84 : f32 to vector<2x8x1xf32>
    %312 = arith.divf %310, %311 : vector<2x8x1xf32>
    %313 = vector.broadcast %312 : vector<2x8x1xf32> to vector<2x8x32xf32>
    %314 = arith.subf %306, %313 : vector<2x8x32xf32>
    %315 = arith.mulf %314, %314 : vector<2x8x32xf32>
    %cst_85 = arith.constant dense<0.000000e+00> : vector<2x8xf32>
    %316 = vector.multi_reduction <add>, %315, %cst_85 [2] : vector<2x8x32xf32> to vector<2x8xf32>
    %317 = vector.shape_cast %316 : vector<2x8xf32> to vector<2x8x1xf32>
    %cst_86 = arith.constant 3.200000e+01 : f32
    %318 = vector.broadcast %cst_86 : f32 to vector<2x8x1xf32>
    %319 = arith.divf %317, %318 : vector<2x8x1xf32>
    %320 = vector.broadcast %312 : vector<2x8x1xf32> to vector<2x8x32xf32>
    %321 = arith.subf %306, %320 : vector<2x8x32xf32>
    %cst_87 = arith.constant 9.99999974E-6 : f32
    %322 = vector.broadcast %cst_87 : f32 to vector<2x8x1xf32>
    %323 = arith.addf %319, %322 : vector<2x8x1xf32>
    %324 = math.rsqrt %323 : vector<2x8x1xf32>
    %325 = vector.broadcast %324 : vector<2x8x1xf32> to vector<2x8x32xf32>
    %326 = arith.mulf %321, %325 : vector<2x8x32xf32>
    %327 = vector.shape_cast %307 : vector<1x32xf32> to vector<1x1x32xf32>
    %328 = vector.broadcast %327 : vector<1x1x32xf32> to vector<2x8x32xf32>
    %329 = arith.mulf %326, %328 : vector<2x8x32xf32>
    %330 = vector.shape_cast %308 : vector<1x32xf32> to vector<1x1x32xf32>
    %331 = vector.broadcast %330 : vector<1x1x32xf32> to vector<2x8x32xf32>
    %332 = arith.addf %329, %331 : vector<2x8x32xf32>
    %333 = vector.shape_cast %332 : vector<2x8x32xf32> to vector<16x32xf32>
    %334 = arith.truncf %333 : vector<16x32xf32> to vector<16x32xbf16>
    %c0_88 = arith.constant 0 : index
    %c0_89 = arith.constant 0 : index
    %c0_90 = arith.constant 0 : index
    %335 = vector.load %arg10[%c0_88, %c0_89, %c0_90] : memref<1x32x64xbf16, #tpu.memory_space<vmem>>, vector<1x32x64xbf16>
    %336 = vector.shape_cast %335 : vector<1x32x64xbf16> to vector<32x64xbf16>
    %cst_91 = arith.constant dense<0.000000e+00> : vector<16x64xf32>
    %337 = tpu.matmul %334, %336, %cst_91 {dimension_numbers = #tpu.dot_dimension_numbers<[1], [0], [0], [1], [0, 0, 1, 1], [], []>} : vector<16x32xbf16>, vector<32x64xbf16>, vector<16x64xf32> -> vector<16x64xf32>
    %338 = vector.broadcast %9 : vector<1x64xf32> to vector<16x64xf32>
    %339 = arith.addf %337, %338 : vector<16x64xf32>
    %cst_92 = arith.constant 0.000000e+00 : f32
    %340 = vector.broadcast %cst_92 : f32 to vector<16x64xf32>
    %341 = arith.maximumf %339, %340 : vector<16x64xf32>
    %342 = arith.truncf %341 : vector<16x64xf32> to vector<16x64xbf16>
    %c0_93 = arith.constant 0 : index
    %c0_94 = arith.constant 0 : index
    %c0_95 = arith.constant 0 : index
    %343 = vector.load %arg11[%c0_93, %c0_94, %c0_95] : memref<1x64x32xbf16, #tpu.memory_space<vmem>>, vector<1x64x32xbf16>
    %344 = vector.shape_cast %343 : vector<1x64x32xbf16> to vector<64x32xbf16>
    %cst_96 = arith.constant dense<0.000000e+00> : vector<16x32xf32>
    %345 = tpu.matmul %342, %344, %cst_96 {dimension_numbers = #tpu.dot_dimension_numbers<[1], [0], [0], [1], [0, 0, 1, 1], [], []>} : vector<16x64xbf16>, vector<64x32xbf16>, vector<16x32xf32> -> vector<16x32xf32>
    %346 = vector.extract_strided_slice %7 {offsets = [14, 0], sizes = [1, 32], strides = [1, 1]} : vector<16x32xf32> to vector<1x32xf32>
    %347 = vector.broadcast %346 : vector<1x32xf32> to vector<16x32xf32>
    %348 = arith.addf %345, %347 : vector<16x32xf32>
    %349 = vector.shape_cast %348 : vector<16x32xf32> to vector<2x8x32xf32>
    %350 = arith.addf %306, %349 : vector<2x8x32xf32>
    %c0_97 = arith.constant 0 : index
    %c0_98 = arith.constant 0 : index
    %c0_99 = arith.constant 0 : index
    %351 = vector.load %arg17[%c0_97, %c0_98, %c0_99] : memref<2x8x32xf32, #tpu.memory_space<vmem>>, vector<2x8x32xf32>
    tpu.vector_store %arg17[%c0_97, %c0_98, %c0_99], %350 {strides = array<i32>} : memref<2x8x32xf32, #tpu.memory_space<vmem>>, vector<2x8x32xf32>,
    %c1_i32 = arith.constant 1 : i32
    %352 = arith.cmpi eq, %arg1, %c1_i32 : i32
    %353 = arith.extui %352 : i1 to i32
    %c0_i32_100 = arith.constant 0 : i32
    %354 = arith.cmpi ne, %353, %c0_i32_100 : i32
    scf.if %354 {
      %c0_101 = arith.constant 0 : index
      %c0_102 = arith.constant 0 : index
      %355 = vector.load %arg14[%c0_101, %c0_102] : memref<1x32xf32, #tpu.memory_space<vmem>>, vector<1x32xf32>
      %c0_103 = arith.constant 0 : index
      %c0_104 = arith.constant 0 : index
      %356 = vector.load %arg15[%c0_103, %c0_104] : memref<1x32xf32, #tpu.memory_space<vmem>>, vector<1x32xf32>
      %cst_105 = arith.constant dense<0.000000e+00> : vector<2x8xf32>
      %357 = vector.multi_reduction <add>, %350, %cst_105 [2] : vector<2x8x32xf32> to vector<2x8xf32>
      %358 = vector.shape_cast %357 : vector<2x8xf32> to vector<2x8x1xf32>
      %cst_106 = arith.constant 3.200000e+01 : f32
      %359 = vector.broadcast %cst_106 : f32 to vector<2x8x1xf32>
      %360 = arith.divf %358, %359 : vector<2x8x1xf32>
      %361 = vector.broadcast %360 : vector<2x8x1xf32> to vector<2x8x32xf32>
      %362 = arith.subf %350, %361 : vector<2x8x32xf32>
      %363 = arith.mulf %362, %362 : vector<2x8x32xf32>
      %cst_107 = arith.constant dense<0.000000e+00> : vector<2x8xf32>
      %364 = vector.multi_reduction <add>, %363, %cst_107 [2] : vector<2x8x32xf32> to vector<2x8xf32>
      %365 = vector.shape_cast %364 : vector<2x8xf32> to vector<2x8x1xf32>
      %cst_108 = arith.constant 3.200000e+01 : f32
      %366 = vector.broadcast %cst_108 : f32 to vector<2x8x1xf32>
      %367 = arith.divf %365, %366 : vector<2x8x1xf32>
      %368 = vector.broadcast %360 : vector<2x8x1xf32> to vector<2x8x32xf32>
      %369 = arith.subf %350, %368 : vector<2x8x32xf32>
      %cst_109 = arith.constant 9.99999974E-6 : f32
      %370 = vector.broadcast %cst_109 : f32 to vector<2x8x1xf32>
      %371 = arith.addf %367, %370 : vector<2x8x1xf32>
      %372 = math.rsqrt %371 : vector<2x8x1xf32>
      %373 = vector.broadcast %372 : vector<2x8x1xf32> to vector<2x8x32xf32>
      %374 = arith.mulf %369, %373 : vector<2x8x32xf32>
      %375 = vector.shape_cast %355 : vector<1x32xf32> to vector<1x1x32xf32>
      %376 = vector.broadcast %375 : vector<1x1x32xf32> to vector<2x8x32xf32>
      %377 = arith.mulf %374, %376 : vector<2x8x32xf32>
      %378 = vector.shape_cast %356 : vector<1x32xf32> to vector<1x1x32xf32>
      %379 = vector.broadcast %378 : vector<1x1x32xf32> to vector<2x8x32xf32>
      %380 = arith.addf %377, %379 : vector<2x8x32xf32>
      %c0_110 = arith.constant 0 : index
      %c0_111 = arith.constant 0 : index
      %c0_112 = arith.constant 0 : index
      %381 = vector.load %arg16[%c0_110, %c0_111, %c0_112] : memref<2x8x32xf32, #tpu.memory_space<vmem>>, vector<2x8x32xf32>
      tpu.vector_store %arg16[%c0_110, %c0_111, %c0_112], %380 {strides = array<i32>} : memref<2x8x32xf32, #tpu.memory_space<vmem>>, vector<2x8x32xf32>,
    } else {
    }
    return
  }
  func.func @transform_0(%arg0: i32, %arg1: i32) -> (i32, i32, i32) {
    %c0_i32 = arith.constant 0 : i32
    %c0_i32_0 = arith.constant 0 : i32
    %c0_i32_1 = arith.constant 0 : i32
    return %arg0, %c0_i32, %c0_i32_0 : i32, i32, i32
  }
  func.func @transform_1(%arg0: i32, %arg1: i32) -> (i32, i32, i32) {
    %c0_i32 = arith.constant 0 : i32
    %c0_i32_0 = arith.constant 0 : i32
    %c0_i32_1 = arith.constant 0 : i32
    return %arg0, %c0_i32, %c0_i32_0 : i32, i32, i32
  }
  func.func @transform_2(%arg0: i32, %arg1: i32) -> (i32, i32) {
    %c0_i32 = arith.constant 0 : i32
    %c0_i32_0 = arith.constant 0 : i32
    %c0_i32_1 = arith.constant 0 : i32
    return %c0_i32, %c0_i32_0 : i32, i32
  }
  func.func @transform_3(%arg0: i32, %arg1: i32) -> (i32, i32, i32) {
    %c0_i32 = arith.constant 0 : i32
    %c0_i32_0 = arith.constant 0 : i32
    %c0_i32_1 = arith.constant 0 : i32
    return %arg1, %c0_i32, %c0_i32_0 : i32, i32, i32
  }
  func.func @transform_4(%arg0: i32, %arg1: i32) -> (i32, i32, i32) {
    %c0_i32 = arith.constant 0 : i32
    %c0_i32_0 = arith.constant 0 : i32
    %c0_i32_1 = arith.constant 0 : i32
    return %arg1, %c0_i32, %c0_i32_0 : i32, i32, i32
  }
  func.func @transform_5(%arg0: i32, %arg1: i32) -> (i32, i32, i32) {
    %c0_i32 = arith.constant 0 : i32
    %c0_i32_0 = arith.constant 0 : i32
    %c0_i32_1 = arith.constant 0 : i32
    return %arg1, %c0_i32, %c0_i32_0 : i32, i32, i32
  }
  func.func @transform_6(%arg0: i32, %arg1: i32) -> (i32, i32, i32) {
    %c0_i32 = arith.constant 0 : i32
    %c0_i32_0 = arith.constant 0 : i32
    %c0_i32_1 = arith.constant 0 : i32
    return %arg1, %c0_i32, %c0_i32_0 : i32, i32, i32
  }
  func.func @transform_7(%arg0: i32, %arg1: i32) -> (i32, i32, i32) {
    %c0_i32 = arith.constant 0 : i32
    %c0_i32_0 = arith.constant 0 : i32
    %c0_i32_1 = arith.constant 0 : i32
    return %arg1, %c0_i32, %c0_i32_0 : i32, i32, i32
  }
  func.func @transform_8(%arg0: i32, %arg1: i32) -> (i32, i32, i32) {
    %c0_i32 = arith.constant 0 : i32
    %c0_i32_0 = arith.constant 0 : i32
    %c0_i32_1 = arith.constant 0 : i32
    return %arg1, %c0_i32, %c0_i32_0 : i32, i32, i32
  }
  func.func @transform_9(%arg0: i32, %arg1: i32) -> (i32, i32, i32) {
    %c0_i32 = arith.constant 0 : i32
    %c0_i32_0 = arith.constant 0 : i32
    %c0_i32_1 = arith.constant 0 : i32
    return %arg1, %c0_i32, %c0_i32_0 : i32, i32, i32
  }
  func.func @transform_10(%arg0: i32, %arg1: i32) -> (i32, i32, i32) {
    %c0_i32 = arith.constant 0 : i32
    %c0_i32_0 = arith.constant 0 : i32
    %c0_i32_1 = arith.constant 0 : i32
    return %arg1, %c0_i32, %c0_i32_0 : i32, i32, i32
  }
  func.func @transform_11(%arg0: i32, %arg1: i32) -> (i32, i32, i32) {
    %c0_i32 = arith.constant 0 : i32
    %c0_i32_0 = arith.constant 0 : i32
    %c0_i32_1 = arith.constant 0 : i32
    return %arg1, %c0_i32, %c0_i32_0 : i32, i32, i32
  }
  func.func @transform_12(%arg0: i32, %arg1: i32) -> (i32, i32) {
    %c0_i32 = arith.constant 0 : i32
    %c0_i32_0 = arith.constant 0 : i32
    %c0_i32_1 = arith.constant 0 : i32
    return %c0_i32, %c0_i32_0 : i32, i32
  }
  func.func @transform_13(%arg0: i32, %arg1: i32) -> (i32, i32) {
    %c0_i32 = arith.constant 0 : i32
    %c0_i32_0 = arith.constant 0 : i32
    %c0_i32_1 = arith.constant 0 : i32
    return %c0_i32, %c0_i32_0 : i32, i32
  }
  func.func @transform_14(%arg0: i32, %arg1: i32) -> (i32, i32, i32) {
    %c0_i32 = arith.constant 0 : i32
    %c0_i32_0 = arith.constant 0 : i32
    %c0_i32_1 = arith.constant 0 : i32
    return %arg0, %c0_i32, %c0_i32_0 : i32, i32, i32
  }
}

</mosaic_0001>

<bundles_post_ra>
// kernel: tpu_custom_call.1
= control target key start
LH: loop header
LB: loop body
LE: loop exit
PB: predicated region body
PF: predicated region fallthrough
CT: control target
= control target key end

     0   :  { %s4011_s0 = inlined_call_operand.hbm [shape: f32[2,8,32], index: 0, kind: input, shape index: {}]   ;;  %s4012_s1 = inlined_call_operand.hbm [shape: bf16[2,16,32], index: 1, kind: input, shape index: {}]   ;;  %s4013_s2 = inlined_call_operand.hbm [shape: f32[8,8], index: 2, kind: input, shape index: {}]   ;;  %s4014_s3 = inlined_call_operand.vmem [shape: bf16[2,32,96], index: 3, kind: input, shape index: {}]   ;;  %s4015_s4 = inlined_call_operand.vmem [shape: bf16[2,32,32], index: 4, kind: input, shape index: {}]   ;;  %s4016_s5 = inlined_call_operand.vmem [shape: bf16[2,32,32], index: 5, kind: input, shape index: {}]   ;;  %s4017_s6 = inlined_call_operand.hbm [shape: bf16[2,32,64], index: 6, kind: input, shape index: {}]   ;;  %s4018_s7 = inlined_call_operand.hbm [shape: bf16[2,32,32], index: 7, kind: input, shape index: {}]   ;;  %s4019_s8 = inlined_call_operand.hbm [shape: bf16[2,32,64], index: 8, kind: input, shape index: {}]   ;;  %s4020_s9 = inlined_call_operand.vmem [shape: bf16[2,64,32], index: 9, kind: input, shape index: {}]   ;;  %s4021_s10 = inlined_call_operand.hbm [shape: f32[2,16,32], index: 10, kind: input, shape index: {}]   ;;  %s4022_s11 = inlined_call_operand.vmem [shape: f32[2,1,64], index: 11, kind: input, shape index: {}]   ;;  %s4023_s12 = inlined_call_operand.vmem [shape: f32[1,32], index: 12, kind: input, shape index: {}]   ;;  %s4024_s13 = inlined_call_operand.vmem [shape: f32[1,32], index: 13, kind: input, shape index: {}]   ;;  %s4025_s14 = inlined_call_operand.hbm [shape: f32[2,8,32], index: 14, kind: output, shape index: {}]  }
   0x1   :  { %4034 = sst [smem:[#allocation26_spill]] %s4011_s0 }
   0x2   :  { %4035 = sst [smem:[#allocation27_spill]] %s4012_s1 }
   0x3   :  { %4036 = sst [smem:[#allocation28_spill]] %s4013_s2 }
   0x4   :  { %4037 = sst [smem:[#allocation29_spill]] %s4015_s4 }
   0x5   :  { %4038 = sst [smem:[#allocation30_spill]] %s4016_s5 }
   0x6   :  { %4039 = sst [smem:[#allocation31_spill]] %s4017_s6 }
   0x7   :  { %4040 = sst [smem:[#allocation32_spill]] %s4019_s8 }
   0x8   :  { %4041 = sst [smem:[#allocation33_spill]] %s4020_s9 }
   0x9   :  { %4042 = sst [smem:[#allocation34_spill]] %s4022_s11 }
   0xa   :  { %4043 = sst [smem:[#allocation35_spill]] %s4023_s12 }
   0xb   :  { %4044 = sst [smem:[#allocation36_spill]] %s4024_s13 }
   0xc   :  { %4045 = sst [smem:[#allocation37_spill]] %s4025_s14 }
   0xd   :  { %19 = vsyncpa [#allocation4], 0 }
   0xe   :  { %20 = vsyncpa [#allocation7], 0 }
   0xf   :  { %21 = vsyncpa [#allocation10], 0 }
  0x10   :  { %23 = vsyncpa [#allocation10 + $0x1], 0 }
  0x11   :  { %24 = vsyncpa [#allocation13], 0 }
  0x12   :  { %26 = vsyncpa [#allocation13 + $0x1], 0 }
  0x13   :  { %27 = vsyncpa [#allocation5], 0  ;;  %s3411_s29 = smov 0   ;;  %s3413_s30 = smov 0  }
  0x14   :  { %s3415_s15 = smov 0   ;;  %s3417_s16 = smov 0  }
  0x15   :  { %s3419_s17 = smov 0   ;;  %s3421_s18 = smov 0  }
  0x16 LB: > { %4046 = sst [smem:[#allocation21_spill]] %s3297_s15  ;;  %s3440_s19 = sadd.s32 4294967295, %s3309_s18   ;;  %s3309_s18 = sphi %s3421_s18, %s33_s18   ;;  %s3305_s17 = sphi %s3419_s17, %s4075_s17   ;;  %s3301_s16 = sphi %s3417_s16, %s4074_s16   ;;  %s3297_s15 = sphi %s3415_s15, %s4073_s15   ;;  %s3293_s30 = sphi %s3413_s30, %s4077_s30   ;;  %s3289_s29 = sphi %s3411_s29, %s4076_s29  }
  0x17   : > { %4047 = sst [smem:[#allocation22_spill]] %s3305_s17  ;;  %p216_p0 = scmp.ne.s32.totalorder %s3293_s30, %s3289_s29 }
  0x18   : > { %4048 = sst [smem:[#allocation23_spill]] %s3309_s18  ;;  %p217_p1 = scmp.eq.s32.totalorder %s3440_s19, 0 }
  0x19   : > { %p2582_p2 = scmp.ge.s32.totalorder %s3309_s18, 1  ;;  %p425_p3 = scmp.lt.s32.totalorder %s3309_s18, 3 }
  0x1a   : > { %p3448_p4 = por %p217_p1, %p216_p0  ;;  %s4050_s1 = sld [smem:[#allocation27_spill]] }
  0x1b   : > { %p3455_p5 = pnand %p2582_p2, %p425_p3  ;;  %s3311_s25 = smov [#allocation6]  }
  0x1c   : > { %s459_s26 = sshll.u32 %s3311_s25, 4  ;;  %s4026_s28 = smov 64   ;;  %s460_s26 = int_to_ptr.vmem [resolvable:$true] %s459_s26 }
  0x1d   : > { %p2783_p6 = pneg %p3455_p5  ;;  %s4028_s29 = smov 4  }
  0x1e   : > { %s42_s21 = sadd.s32 1, %s3305_s17  ;;  %s203_s22 = sadd.s32 1, %s3297_s15 }
  0x1f   : > { %p3463_p7 = pnand %p2783_p6, %p217_p1  ;;  %p43_p8 = scmp.ge.s32.totalorder %s42_s21, 2 }
  0x20   : > { %s457_s23 = sshll.u32 %s4050_s1, 4  ;;  %p210_p9 = scmp.ne.s32.totalorder %s3297_s15, %s3293_s30  ;;  %s458_s23 = int_to_ptr.hbm [resolvable:$true] %s457_s23 }
  0x21   : > { %2789 = dma.hbm_to_vmem [thread:$0]  (!%p3463_p7), %s458_s23, 256, %s460_s26, [#allocation7], %s4026_s28, %s4026_s28, %s4028_s29  }
  0x22   : > { %p211_p10 = scmp.eq.s32.totalorder %s3309_s18, 0  ;;  %s4079_s21 = smov (%p43_p8, %s42_s21), 0 }
  0x23   : > { %4053 = sst [smem:[#allocation24_spill]] %s4079_s21  ;;  %p2809_p12 = scmp.lt.s32.totalorder %s3309_s18, 2 }
  0x24   : > { %p3479_p11 = por %p211_p10, %p210_p9  ;;  %s200_s1 = ssub.s32 %s3305_s17, %s4079_s21 }
  0x25   : > { %s515_s14 = sand.u32 1, %s3309_s18   ;;  %p201_p13 = scmp.eq.s32.totalorder %s200_s1, 0 }
  0x26   : > { %s517_s13 = sand.u32 1, %s3297_s15   ;;  %s3489_s23 = sshll.u32 %s3305_s17, 4 }
  0x27   : > { %s3492_s26 = scalar_select %p201_p13, %s3297_s15, %s203_s22  }
  0x28   : > { %s3494_s28 = sshll.u32 %s517_s13, 4  ;;  %s4056_s6 = sld [smem:[#allocation31_spill]] }
  0x29   : > { %4055 = sst [smem:[#allocation25_spill]] %s3492_s26  ;;  %s519_s21 = scalar_lea.vmem [#allocation9], %s3494_s28 }
  0x2a   : > { %s527_s5 = sshll.u32 %s519_s21, 4  ;;  %p3505_p0 = pnand %p2809_p12, %p3479_p11  ;;  %s528_s5 = int_to_ptr.vmem [resolvable:$true] %s527_s5 }
  0x2b   : > { %s4058_s8 = sld [smem:[#allocation32_spill]]  ;;  %s3513_s29 = scalar_lea.sflag [#allocation10], %s515_s14 }
  0x2c   : > { %s563_s25 = scalar_lea.vmem [#allocation12], %s3494_s28  ;;  %s3522_s26 = scalar_lea.sflag [#allocation13], %s515_s14 }
  0x2d   : > { %s571_s17 = sshll.u32 %s563_s25, 4  ;;  %s4061_s0 = sld [smem:[#allocation26_spill]]  ;;  %s572_s17 = int_to_ptr.vmem [resolvable:$true] %s571_s17 }
  0x2e   : > { %s524_s11 = scalar_lea.hbm %s4056_s6, %s3489_s23  ;;  %s4060_s6 = smov 64  }
  0x2f   : > { %s525_s9 = sshll.u32 %s524_s11, 4  ;;  %s4059_s11 = smov 4   ;;  %s526_s9 = int_to_ptr.hbm [resolvable:$true] %s525_s9 }
  0x30   : > { %2796 = dma.hbm_to_vmem [thread:$0]  (!%p3505_p0), %s526_s9, 256, %s528_s5, %s3513_s29, %s4060_s6, %s4060_s6, %s4059_s11  }
  0x31   : > { %s568_s12 = scalar_lea.hbm %s4058_s8, %s3489_s23  ;;  %s3314_s9 = smov [#allocation3]  }
  0x32   : > { %s569_s21 = sshll.u32 %s568_s12, 4  ;;  %s441_s12 = sshll.u32 %s3314_s9, 4  ;;  %s570_s21 = int_to_ptr.hbm [resolvable:$true] %s569_s21  ;;  %s442_s12 = int_to_ptr.vmem [resolvable:$true] %s441_s12 }
  0x33   : > { %2802 = dma.hbm_to_vmem [thread:$0]  (!%p3505_p0), %s570_s21, 256, %s572_s17, %s3522_s26, %s4060_s6, %s4060_s6, %s4059_s11  }
  0x34   : > { %s439_s5 = sshll.u32 %s4061_s0, 4  ;;  %s4062_s2 = sld [smem:[#allocation28_spill]]  ;;  %s440_s5 = int_to_ptr.hbm [resolvable:$true] %s439_s5 }
  0x35   : > { %s3315_s15 = smov 128   ;;  %s3316_s18 = smov 8  }
  0x36   : > { %2786 = dma.hbm_to_vmem [thread:$0]  (!%p3463_p7), %s440_s5, 256, %s442_s12, [#allocation4], %s3315_s15, %s3315_s15, %s3316_s18  }
  0x37   : > { %s3317_s17 = smov [#allocation8]   ;;  %s546_s9 = scalar_lea.hbm %s4018_s7, %s3489_s23 }
  0x38   : > { %s474_s21 = sshll.u32 %s3317_s17, 4  ;;  %s547_s8 = sshll.u32 %s546_s9, 4  ;;  %s475_s21 = int_to_ptr.vmem [resolvable:$true] %s474_s21  ;;  %s548_s8 = int_to_ptr.hbm [resolvable:$true] %s547_s8 }
  0x39   : > { %s541_s25 = scalar_lea.vmem [#allocation11], %s3494_s28  ;;  %s598_s17 = scalar_lea.hbm %s4021_s10, %s3489_s23 }
  0x3a   : > { %s472_s14 = sshll.u32 %s4062_s2, 4  ;;  %s549_s0 = sshll.u32 %s541_s25, 4  ;;  %s473_s14 = int_to_ptr.hbm [resolvable:$true] %s472_s14  ;;  %s550_s0 = int_to_ptr.vmem [resolvable:$true] %s549_s0 }
  0x3b   : > { %2792 = dma.hbm_to_vmem [thread:$0]  (!%p3463_p7), %s473_s14, 128, %s475_s21, [#allocation7]  }
  0x3c   : > { %2799 = dma.hbm_to_vmem [thread:$0]  (!%p3505_p0), %s548_s8, 256, %s550_s0, %s3513_s29, %s4060_s6, %s4060_s6, %s4059_s11  }
  0x3d   : > { %s599_s2 = sshll.u32 %s598_s17, 4  ;;  %s593_s4 = scalar_lea.vmem [#allocation14], %s3494_s28  ;;  %s600_s2 = int_to_ptr.hbm [resolvable:$true] %s599_s2 }
  0x3e   : > { %s601_s22 = sshll.u32 %s593_s4, 4  ;;  %619 = sbr.rel (%p3455_p5) target bundleno = 4028 (0xfbc), region = 76  ;;  %s602_s22 = int_to_ptr.vmem [resolvable:$true] %s601_s22 }
  0x3f   : > { %2805 = dma.hbm_to_vmem [thread:$0]  (!%p3505_p0), %s600_s2, 256, %s602_s22, %s3522_s26, %s3315_s15, %s3315_s15, %s3316_s18  }
  0x43   : > { %3268 = dma.done.wait (%p217_p1), [#allocation4], 256  }
  0x44   : > { %3270 = vsyncadd (%p217_p1), [#allocation4], 4294967040 }
  0x45   : > { %3272 = dma.done.wait (%p217_p1), [#allocation7], 384  }
  0x46   : > { %3274 = vsyncadd (%p217_p1), [#allocation7], 4294966912  ;;  %s636_s0 = sand.u32 1, %s3440_s19   ;;  %s638_s2 = sand.u32 1, %s3293_s30  }
  0x47   : > { %s3571_s4 = sshll.u32 %s638_s2, 4  ;;  %s637_s6 = scalar_lea.sflag [#allocation10], %s636_s0 }
  0x48   : > { %s640_s15 = scalar_lea.vmem [#allocation9], %s3571_s4 }
  0x49   : > { %3276 = dma.done.wait (%p3448_p4), %s637_s6, 512  }
  0x4a   : > { %3278 = vsyncadd (%p3448_p4), %s637_s6, 4294966784  ;;  %s650_s18 = scalar_lea.vmem [#allocation11], %s3571_s4  ;;  %s657_s24 = scalar_lea.sflag [#allocation13], %s636_s0 }
  0x4b   : > { %s660_s27 = scalar_lea.vmem [#allocation12], %s3571_s4 }
  0x4c   : > { %3280 = dma.done.wait (%p3448_p4), %s657_s24, 512  }
  0x4d   : > { %3282 = vsyncadd (%p3448_p4), %s657_s24, 4294966784  ;;  %p751_p1 = scmp.lt.s32.totalorder %s3301_s16, 1  ;;  %s4063_s20 = sld [smem:[#allocation29_spill]] }
  0x4e   : > { %s4064_s25 = sld [smem:[#allocation30_spill]]  ;;  %s3615_s29 = scalar_lea.vmem [#allocation14], %s3571_s4 }
  0x4f   : > { %s3586_s28 = scalar_select %p751_p1, %s3301_s16, 1 }
  0x50   : > { %s4065_s22 = sld [smem:[#allocation33_spill]]  ;;  %p2615_p2 = scmp.ne.s32.totalorder %s3301_s16, 0 }
  0x51   : > { %s2737_s23 = sshll.u32 %s3586_s28, 4  ;;  %s2740_s26 = sshll.u32 %s3586_s28, 5 }
  0x52   : > { %s3593_s11 = scalar_lea.vmem %s4014_s3, %s2737_s23  ;;  %s4066_s24 = sld [smem:[#allocation34_spill]] }
  0x53   : > { %s3598_s13 = scalar_lea.vmem %s4063_s20, %s2737_s23 }
  0x54   : > { %s3603_s5 = scalar_lea.vmem %s4064_s25, %s2737_s23  ;;  %779 = sbr.rel (%p2615_p2) target bundleno = 92 (0x5c), region = 108 }
  0x56   : > { %s3608_s0 = scalar_lea.vmem %s4065_s22, %s2740_s26 }
  0x58   : > { %s773_s1 = scalar_lea.vmem %s4066_s24, %s3586_s28 }
  0x59   : > { %v780_v0 = vld [vmem:[#allocation3] sm:$0xff]  ;;  %vm782_vm0 = vcmask 261120   ;;  %v781_v1 = vld [vmem:[#allocation3 + $0x8] sm:$0xff] }
  0x5a   : > { %783 = vst.msk [vmem:[#allocation2] sm:$0xff] %vm782_vm0, %v780_v0 }
  0x5b   : > { %784 = vst.msk [vmem:[#allocation2 + $0x8] sm:$0xff] %vm782_vm0, %v781_v1 }
  0x5c PF: > { %vm795_vm1 = vcmask 261120   ;;  %v3318_v6 = vmov 32.0   ;;  %v2744_v23 = vld [vmem:[%s3593_s11 + $0x8] sm:$0xff]  ;;  %v2743_v25 = vld [vmem:[%s3593_s11] sm:$0xff]  ;;  %s3319_s23 = smov 32   ;;  %s3320_s26 = smov 88  }
  0x5d   : > { %2919 = vrcp.f32 %v3318_v6  ;;  %879 = vmatpush.bf16.msra.mxu0 %v2744_v23  ;;  %v3638_v28 = vld [vmem:[%s3615_s29] sm:$0xff]  ;;  %s3321_s11 = smov 96   ;;  %s3322_s14 = smov 112   ;;  %vm919_vm9 = vcmask 64512   ;;  %vm999_vm10 = vcmask 1043456   ;;  %vm1420_vm11 = vcmask 130048  }
  0x5e   : > { %v892_v29 = vperm.slane %v3638_v28, 7  ;;  %v847_v46 = vperm.slane %v3638_v28, 0  ;;  %v850_v51 = vperm.slane %v3638_v28, 1  ;;  %v887_v57 = vperm.slane %v3638_v28, 6  ;;  %s3323_s21 = smov 120   ;;  %s3324_s20 = smov 72  }
  0x5f   : > { %s3325_s9 = smov 80   ;;  %s3326_s8 = smov 104   ;;  %vm1423_vm12 = vcmask 195584  }
  0x60   : > { %894 = vrot.lane.b32.xlu2 %v892_v29, %s3319_s23  ;;  %s3327_s25 = smov 64   ;;  %s3328_s12 = smov 56  }
  0x61   : > { %v3618_v2 = vld [vmem:[#allocation2] sm:$0xff]  ;;  %880 = vmatpush.bf16.msra.mxu0 %v2743_v25  ;;  %s3329_s17 = smov 48   ;;  %s3330_s22 = smov 40  }
  0x62   : > { %v796_v3 = vsel %vm795_vm1, %v3618_v2, 0.0  ;;  %v3622_v4 = vld [vmem:[#allocation2 + $0x8] sm:$0xff]  ;;  %s3331_s2 = smov 8   ;;  %s3332_s6 = smov 16  }
  0x63   : > { %797 = vadd.xlane.f32.xlu0 %v796_v3  ;;  %v799_v5 = vsel %vm795_vm1, %v3622_v4, 0.0  ;;  %v2920_v7 = vpop.eup %2919  ;;  %s3333_s24 = smov 24   ;;  %p2728_p3 = scmp.ne.s32.totalorder %s3301_s16, 1 }
  0x64   : > { %v803_v8 = vmul.f32 32.0, %v2920_v7  ;;  %vm807_vm2 = vweird.f32 %v2920_v7  ;;  %s4068_s28 = sld [smem:[#allocation35_spill]] (!%p2728_p3) }
  0x66   : > { %v804_v9 = vsub.f32 1.0, %v803_v8 }
  0x68   : > { %v805_v10 = vmul.f32 %v2920_v7, %v804_v9 }
  0x6a   : > { %v806_v11 = vadd.f32 %v2920_v7, %v805_v10 }
  0x6b   : > { %800 = vadd.xlane.f32.xlu0 %v799_v5 }
  0x6c   : > { %v3626_v12 = vsel %vm807_vm2, %v2920_v7, %v806_v11 }
  0xba   : > { %v895_v56 = vpop.permute.xlu2 %894 }
  0xd6   : > { %v798_v13 = vpop.xlane.xlu0 %797 }
  0xd7   : > { %v809_v14 = vmul.f32 %v3626_v12, %v798_v13 }
  0xd9   : > { %v811_v15 = vsub.f32 %v3618_v2, %v809_v14 }
  0xdb   : > { %v813_v16 = vmul.f32 %v811_v15, %v811_v15 }
  0xdd   : > { %v815_v17 = vsel %vm795_vm1, %v813_v16, 0.0 }
  0xde   : > { %816 = vadd.xlane.f32.xlu1 %v815_v17  ;;  %v801_v18 = vpop.xlane.xlu0 %800 }
  0xdf   : > { %v810_v19 = vmul.f32 %v3626_v12, %v801_v18 }
  0xe1   : > { %v812_v20 = vsub.f32 %v3622_v4, %v810_v19 }
  0xe3   : > { %v814_v21 = vmul.f32 %v812_v20, %v812_v20 }
  0xe5   : > { %v818_v22 = vsel %vm795_vm1, %v814_v21, 0.0 }
  0xe6   : > { %819 = vadd.xlane.f32.xlu1 %v818_v22 }
 0x151   : > { %v817_v24 = vpop.xlane.xlu1 %816 }
 0x152   : > { %v821_v26 = vmul.f32 %v817_v24, %v3626_v12 }
 0x154   : > { %v823_v27 = vadd.f32 1e-05, %v821_v26 }
 0x156   : > { %2921 = vrsqrt.f32 %v823_v27  ;;  %vm831_vm4 = vweird.f32 %v823_v27 }
 0x159   : > { %v820_v30 = vpop.xlane.xlu1 %819 }
 0x15a   : > { %v822_v31 = vmul.f32 %v820_v30, %v3626_v12 }
 0x15c   : > { %v2922_v32 = vpop.eup %2921  ;;  %v824_v33 = vadd.f32 1e-05, %v822_v31 }
 0x15d   : > { %v826_v34 = vmul.f32 %v2922_v32, %v823_v27  ;;  %vm832_vm3 = vweird.f32 %v2922_v32 }
 0x15e   : > { %2923 = vrsqrt.f32 %v824_v33  ;;  %vm833_vm5 = vmor %vm831_vm4, %vm832_vm3  ;;  %vm841_vm7 = vweird.f32 %v824_v33 }
 0x15f   : > { %v827_v35 = vmul.f32 %v2922_v32, %v826_v34 }
 0x161   : > { %v828_v36 = vmul.f32 0.5, %v827_v35 }
 0x163   : > { %v829_v37 = vsub.f32 1.5, %v828_v36 }
 0x164   : > { %v2924_v38 = vpop.eup %2923 }
 0x165   : > { %v830_v39 = vmul.f32 %v2922_v32, %v829_v37  ;;  %v836_v40 = vmul.f32 %v2924_v38, %v824_v33  ;;  %vm842_vm6 = vweird.f32 %v2924_v38 }
 0x166   : > { %vm843_vm8 = vmor %vm841_vm7, %vm842_vm6 }
 0x167   : > { %v837_v41 = vmul.f32 %v2924_v38, %v836_v40  ;;  %v834_v42 = vsel %vm833_vm5, %v2922_v32, %v830_v39 }
 0x168   : > { %v845_v45 = vmul.f32 %v834_v42, %v811_v15  ;;  %v3668_v15 = vld [vmem:[%s3615_s29 + $0x8] sm:$0xff] }
 0x169   : > { %v838_v43 = vmul.f32 0.5, %v837_v41  ;;  %v901_v16 = vperm.slane %v3668_v15, 0  ;;  %v791_v41 = vld [vmem:[#allocation8] sm:$0xff] }
 0x16a   : > { %v848_v50 = vmul.f32 %v847_v46, %v845_v45 }
 0x16b   : > { %v839_v44 = vsub.f32 1.5, %v838_v43 }
 0x16c   : > { %v851_v53 = vadd.f32 %v850_v51, %v848_v50 }
 0x16d   : > { %v840_v47 = vmul.f32 %v2924_v38, %v839_v44 }
 0x16f   : > { %v844_v48 = vsel %vm843_vm8, %v2924_v38, %v840_v47 }
 0x170   : > { %v846_v49 = vmul.f32 %v844_v48, %v812_v20 }
 0x172   : > { %v849_v52 = vmul.f32 %v847_v46, %v846_v49 }
 0x174   : > { %v852_v54 = vadd.f32 %v850_v51, %v849_v52 }
 0x176   : > { %v853_v55 = vpack.c.bf16 %v852_v54, %v851_v53 }
 0x178   : > { %2624 = vmatmul.msk.bf16.vlgmr.msra.gmra.mxu0 %vm795_vm1, %v853_v55 }
 0x1f5   : > { %v3647_v58 = vpop.f32.mrf.mxu0 }
 0x1f6   : > { %v897_v59 = vadd.f32 %v895_v56, %v3647_v58  ;;  %v888_v60 = vadd.f32 %v887_v57, %v3647_v58 }
 0x1f8   : > { %v899_v61 = vpack.c.bf16 %v897_v59, %v897_v59  ;;  %v890_v63 = vpack.c.bf16 %v888_v60, %v888_v60 }
 0x1fa   : > { %v915_v62 = vunpack.c.l.b16 %v899_v61  ;;  %v1041_v6 = vunpack.c.l.b16 %v890_v63 }
 0x1fc   : > { %v916_v0 = vpack.c.b16 %v915_v62, %v915_v62  ;;  %v1042_v9 = vpack.c.b16 %v1041_v6, %v1041_v6 }
 0x1fd   : > { %v3651_v1 = vpop.f32.mrf.mxu0 }
 0x1fe   : > { %v898_v3 = vadd.f32 %v895_v56, %v3651_v1  ;;  %1045 = vrot.lane.b32.xlu1 %v916_v0, %s3320_s26  ;;  %917 = vrot.lane.b32.xlu2 %v916_v0, %s3321_s11  ;;  %v889_v10 = vadd.f32 %v887_v57, %v3651_v1 }
 0x200   : > { %v900_v5 = vpack.c.bf16 %v898_v3, %v898_v3  ;;  %v891_v11 = vpack.c.bf16 %v889_v10, %v889_v10 }
 0x202   : > { %v940_v7 = vunpack.c.l.b16 %v900_v5  ;;  %v1067_v13 = vunpack.c.l.b16 %v891_v11 }
 0x204   : > { %v941_v8 = vpack.c.b16 %v940_v7, %v940_v7  ;;  %v1068_v14 = vpack.c.b16 %v1067_v13, %v1067_v13 }
 0x206   : > { %1162 = vrot.lane.b32.xlu1 %v1042_v9, %s3322_s14  ;;  %1043 = vrot.lane.b32.xlu2 %v1042_v9, %s3323_s21 }
 0x207   : > { %942 = vrot.lane.b32.xlu0 %v941_v8, %s3321_s11 }
 0x20e   : > { %1303 = vrot.lane.b32.xlu1 %v941_v8, %s3324_s20  ;;  %1071 = vrot.lane.b32.xlu2 %v941_v8, %s3320_s26 }
 0x20f   : > { %1164 = vrot.lane.b32.xlu0 %v916_v0, %s3325_s9 }
 0x216   : > { %1069 = vrot.lane.b32.xlu2 %v1068_v14, %s3323_s21 }
 0x217   : > { %1185 = vrot.lane.b32.xlu0 %v1068_v14, %s3322_s14 }
 0x21e   : > { %1187 = vrot.lane.b32.xlu2 %v941_v8, %s3325_s9 }
 0x21f   : > { %1278 = vrot.lane.b32.xlu0 %v1042_v9, %s3326_s8 }
 0x226   : > { %1280 = vrot.lane.b32.xlu2 %v916_v0, %s3324_s20 }
 0x227   : > { %903 = vrot.lane.b32.xlu0 %v901_v16, %s3327_s25 }
 0x22e   : > { %1301 = vrot.lane.b32.xlu2 %v1068_v14, %s3326_s8 }
 0x258   : > { %v918_v17 = vpop.permute.xlu2 %917 }
 0x259   : > { %v924_v18 = vsel %vm919_vm9, %v918_v17, 0 }
 0x25a   : > { %933 = vmatpush.bf16.xpose.msra.mxu1 %v924_v18 }
 0x260   : > { %v1044_v19 = vpop.permute.xlu2 %1043 }
 0x261   : > { %2625 = vmatmul.msk.bf16.vlgmr.msra.gmra.mxu1 %vm919_vm9, %v890_v63 }
 0x268   : > { %v1072_v20 = vpop.permute.xlu2 %1071 }
 0x269   : > { %v1077_v21 = vsel %vm919_vm9, %v1072_v20, 0 }
 0x26a   : > { %1086 = vmatpush.bf16.xpose.msrb.mxu1 %v1077_v21 }
 0x270   : > { %v1046_v22 = vpop.permute.xlu1 %1045  ;;  %v1070_v23 = vpop.permute.xlu2 %1069 }
 0x271   : > { %2630 = vmatmul.msk.bf16.vlgmr.msrb.gmra.mxu1 %vm919_vm9, %v1070_v23  ;;  %v1051_v24 = vsel %vm919_vm9, %v1046_v22, 0 }
 0x272   : > { %1060 = vmatpush.bf16.xpose.msrb.mxu0 %v1051_v24 }
 0x278   : > { %v1163_v25 = vpop.permute.xlu1 %1162  ;;  %v1188_v26 = vpop.permute.xlu2 %1187 }
 0x279   : > { %v943_v27 = vpop.permute.xlu0 %942  ;;  %v1193_v29 = vsel %vm919_vm9, %v1188_v26, 0  ;;  %2629 = vmatmul.msk.bf16.vlgmr.msrb.gmra.mxu0 %vm919_vm9, %v1044_v19 }
 0x27a   : > { %v948_v30 = vsel %vm919_vm9, %v943_v27, 0  ;;  %1202 = vmatpush.bf16.xpose.msra.mxu1 %v1193_v29 }
 0x27b   : > { %957 = vmatpush.bf16.xpose.msra.mxu2 %v948_v30 }
 0x280   : > { %v1304_v31 = vpop.permute.xlu1 %1303  ;;  %v1281_v32 = vpop.permute.xlu2 %1280 }
 0x281   : > { %v1309_v33 = vsel %vm919_vm9, %v1304_v31, 0  ;;  %v1165_v34 = vpop.permute.xlu0 %1164  ;;  %v1286_v35 = vsel %vm919_vm9, %v1281_v32, 0 }
 0x282   : > { %v1170_v36 = vsel %vm919_vm9, %v1165_v34, 0  ;;  %2626 = vmatmul.msk.bf16.vlgmr.msra.gmra.mxu2 %vm919_vm9, %v891_v11  ;;  %1318 = vmatpush.bf16.xpose.msrb.mxu1 %v1309_v33 }
 0x283   : > { %1179 = vmatpush.bf16.xpose.msra.mxu0 %v1170_v36 }
 0x288   : > { %v1302_v38 = vpop.permute.xlu2 %1301 }
 0x289   : > { %v1186_v37 = vpop.permute.xlu0 %1185 }
 0x28a   : > { %2633 = vmatmul.msk.bf16.vlgmr.msra.gmra.mxu0 %vm919_vm9, %v1163_v25  ;;  %2634 = vmatmul.msk.bf16.vlgmr.msra.gmra.mxu1 %vm919_vm9, %v1186_v37 }
 0x28b   : > { %1295 = vmatpush.bf16.xpose.msrb.mxu0 %v1286_v35 }
 0x291   : > { %v1279_v39 = vpop.permute.xlu0 %1278 }
 0x299   : > { %v904_v55 = vpop.permute.xlu0 %903 }
 0x29a   : > { %2637 = vmatmul.msk.bf16.vlgmr.msrb.gmra.mxu0 %vm919_vm9, %v1279_v39  ;;  %2638 = vmatmul.msk.bf16.vlgmr.msrb.gmra.mxu1 %vm919_vm9, %v1302_v38  ;;  %v906_v57 = vadd.f32 %v904_v55, %v3647_v58  ;;  %v907_v59 = vadd.f32 %v904_v55, %v3651_v1 }
 0x29c   : > { %v908_v60 = vpack.c.bf16 %v906_v57, %v906_v57  ;;  %v909_v62 = vpack.c.bf16 %v907_v59, %v907_v59 }
 0x29e   : > { %v992_v0 = vunpack.c.l.b16 %v908_v60  ;;  %v1017_v7 = vunpack.c.l.b16 %v909_v62 }
 0x2a0   : > { %v3699_v9 = vpack.c.b16 %v992_v0, %v992_v0  ;;  %v3702_v58 = vpack.c.b16 %v1017_v7, %v1017_v7 }
 0x2de   : > { %v935_v40 = vpop.f32.mrf.mxu1 }
 0x2df   : > { %v963_v42 = vmul.f32 0.35355338, %v935_v40 }
 0x2e1   : > { %v965_v43 = vadd.f32 %v963_v42, %v791_v41 }
 0x2e3   : > { %v967_v44 = vsel %vm919_vm9, %v965_v43, -inf }
 0x2e4   : > { %968 = vmax.xlane.f32.xlu1 %v967_v44 }
 0x2e6   : > { %v937_v45 = vpop.f32.mrf.mxu1 }
 0x2ee   : > { %v1088_v46 = vpop.f32.mrf.mxu1 }
 0x2ef   : > { %v1093_v47 = vmul.f32 0.35355338, %v1088_v46 }
 0x2f1   : > { %v3691_v48 = vadd.f32 %v1093_v47, %v791_v41 }
 0x2f3   : > { %v1099_v49 = vsel %vm919_vm9, %v3691_v48, -inf }
 0x2f4   : > { %1100 = vmax.xlane.f32.xlu1 %v1099_v49 }
 0x2f6   : > { %v1062_v50 = vpop.f32.mrf.mxu0  ;;  %v1090_v51 = vpop.f32.mrf.mxu1 }
 0x2f7   : > { %v1092_v52 = vmul.f32 0.35355338, %v1062_v50 }
 0x2f9   : > { %v1094_v53 = vadd.f32 %v1092_v52, %v791_v41 }
 0x2fb   : > { %v1096_v54 = vsel %vm919_vm9, %v1094_v53, -inf }
 0x2fc   : > { %1097 = vmax.xlane.f32.xlu0 %v1096_v54 }
 0x2fe   : > { %v1064_v56 = vpop.f32.mrf.mxu0 }
 0x305   : > { %v959_v61 = vpop.f32.mrf.mxu2 }
 0x306   : > { %v964_v63 = vmul.f32 0.35355338, %v959_v61 }
 0x307   : > { %v1181_v3 = vpop.f32.mrf.mxu0  ;;  %v1204_v5 = vpop.f32.mrf.mxu1 }
 0x308   : > { %v966_v6 = vadd.f32 %v964_v63, %v791_v41  ;;  %v1209_v18 = vmul.f32 0.35355338, %v1204_v5  ;;  %v1208_v27 = vmul.f32 0.35355338, %v1181_v3 }
 0x30a   : > { %v970_v8 = vsel %vm919_vm9, %v966_v6, -inf  ;;  %v1211_v19 = vadd.f32 %v1209_v18, %v791_v41  ;;  %v3715_v29 = vadd.f32 %v1208_v27, %v791_v41 }
 0x30b   : > { %971 = vmax.xlane.f32.xlu2 %v970_v8 }
 0x30c   : > { %v1215_v21 = vsel %vm919_vm9, %v1211_v19, -inf  ;;  %v1212_v30 = vsel %vm919_vm9, %v3715_v29, -inf }
 0x30d   : > { %v961_v10 = vpop.f32.mrf.mxu2  ;;  %1120 = vrot.lane.b32.xlu1 %v3699_v9, %s3328_s12 }
 0x30f   : > { %v1183_v1 = vpop.f32.mrf.mxu0  ;;  %v1206_v11 = vpop.f32.mrf.mxu1 }
 0x310   : > { %1019 = vrot.lane.b32.xlu0 %v3702_v58, %s3327_s25 }
 0x317   : > { %v1297_v13 = vpop.f32.mrf.mxu0  ;;  %v1320_v14 = vpop.f32.mrf.mxu1 }
 0x318   : > { %1141 = vrot.lane.b32.xlu0 %v3702_v58, %s3328_s12  ;;  %v1324_v20 = vmul.f32 0.35355338, %v1297_v13  ;;  %v1325_v22 = vmul.f32 0.35355338, %v1320_v14 }
 0x31a   : > { %v1326_v23 = vadd.f32 %v1324_v20, %v791_v41  ;;  %v3710_v24 = vadd.f32 %v1325_v22, %v791_v41 }
 0x31c   : > { %v1328_v25 = vsel %vm919_vm9, %v1326_v23, -inf  ;;  %v1331_v26 = vsel %vm919_vm9, %v3710_v24, -inf }
 0x31f   : > { %v1299_v16 = vpop.f32.mrf.mxu0  ;;  %v1322_v17 = vpop.f32.mrf.mxu1 }
 0x323   : > { %994 = vrot.lane.b32.xlu2 %v3699_v9, %s3327_s25 }
 0x337   : > { %1216 = vmax.xlane.f32.xlu1 %v1215_v21 }
 0x33f   : > { %1329 = vmax.xlane.f32.xlu1 %v1328_v25 }
 0x342   : > { %1332 = vmax.xlane.f32.xlu0 %v1331_v26 }
 0x34c   : > { %1213 = vmax.xlane.f32.xlu2 %v1212_v30 }
 0x357   : > { %v969_v31 = vpop.xlane.xlu1 %968 }
 0x358   : > { %v973_v32 = vsub.f32 %v965_v43, %v969_v31 }
 0x35a   : > { %v975_v33 = vmul.f32 1.442695, %v973_v32 }
 0x35c   : > { %2925 = vpow2.f32 %v975_v33 }
 0x362   : > { %v3719_v34 = vpop.eup %2925 }
 0x363   : > { %v979_v35 = vsel %vm919_vm9, %v3719_v34, 0.0 }
 0x364   : > { %980 = vadd.xlane.f32.xlu0 %v979_v35 }
 0x367   : > { %v1101_v36 = vpop.xlane.xlu1 %1100 }
 0x368   : > { %v1103_v37 = vsub.f32 %v3691_v48, %v1101_v36 }
 0x36a   : > { %v1106_v38 = vmul.f32 1.442695, %v1103_v37 }
 0x36c   : > { %2927 = vpow2.f32 %v1106_v38 }
 0x36f   : > { %v1098_v39 = vpop.xlane.xlu0 %1097 }
 0x370   : > { %v1102_v40 = vsub.f32 %v1094_v53, %v1098_v39 }
 0x372   : > { %v3724_v41 = vpop.eup %2927  ;;  %v1104_v42 = vmul.f32 1.442695, %v1102_v40 }
 0x373   : > { %v1111_v43 = vsel %vm919_vm9, %v3724_v41, 0.0 }
 0x374   : > { %2929 = vpow2.f32 %v1104_v42  ;;  %1112 = vadd.xlane.f32.xlu2 %v1111_v43 }
 0x378   : > { %1257 = vrot.lane.b32.xlu0 %v3702_v58, %s3329_s17 }
 0x37a   : > { %v3729_v44 = vpop.eup %2929 }
 0x37b   : > { %v1108_v45 = vsel %vm919_vm9, %v3729_v44, 0.0 }
 0x37c   : > { %1109 = vadd.xlane.f32.xlu1 %v1108_v45 }
 0x37e   : > { %v972_v46 = vpop.xlane.xlu2 %971 }
 0x37f   : > { %v974_v47 = vsub.f32 %v966_v6, %v972_v46  ;;  %v1121_v48 = vpop.permute.xlu1 %1120 }
 0x380   : > { %v1126_v49 = vsel %vm999_vm10, %v1121_v48, 0 }
 0x381   : > { %v977_v50 = vmul.f32 1.442695, %v974_v47  ;;  %1135 = vmatpush.bf16.msrb.mxu2 %v1126_v49 }
 0x382   : > { %v1020_v51 = vpop.permute.xlu0 %1019 }
 0x383   : > { %2931 = vpow2.f32 %v977_v50  ;;  %v1025_v54 = vsel %vm999_vm10, %v1020_v51, 0 }
 0x386   : > { %v995_v52 = vpop.permute.xlu2 %994 }
 0x387   : > { %v1001_v53 = vsel %vm999_vm10, %v995_v52, 0 }
 0x388   : > { %1010 = vmatpush.bf16.msra.mxu3 %v1001_v53 }
 0x389   : > { %v2932_v55 = vpop.eup %2931 }
 0x38a   : > { %v982_v56 = vsel %vm919_vm9, %v2932_v55, 0.0  ;;  %v1142_v60 = vpop.permute.xlu0 %1141 }
 0x38b   : > { %983 = vadd.xlane.f32.xlu1 %v982_v56 }
 0x38c   : > { %1034 = vmatpush.bf16.msrb.mxu3 %v1025_v54  ;;  %1236 = vrot.lane.b32.xlu2 %v3699_v9, %s3329_s17 }
 0x3aa   : > { %v1217_v57 = vpop.xlane.xlu1 %1216 }
 0x3ab   : > { %v1219_v59 = vsub.f32 %v1211_v19, %v1217_v57 }
 0x3ad   : > { %v1222_v61 = vmul.f32 1.442695, %v1219_v59 }
 0x3af   : > { %2933 = vpow2.f32 %v1222_v61 }
 0x3b2   : > { %v1330_v62 = vpop.xlane.xlu1 %1329 }
 0x3b3   : > { %v1334_v63 = vsub.f32 %v1326_v23, %v1330_v62 }
 0x3b5   : > { %v2934_v0 = vpop.eup %2933  ;;  %v1336_v3 = vmul.f32 1.442695, %v1334_v63  ;;  %v1333_v5 = vpop.xlane.xlu0 %1332 }
 0x3b6   : > { %v1335_v6 = vsub.f32 %v3710_v24, %v1333_v5  ;;  %v1227_v7 = vsel %vm919_vm9, %v2934_v0, 0.0  ;;  %v1147_v24 = vsel %vm999_vm10, %v1142_v60, 0 }
 0x3b7   : > { %2935 = vpow2.f32 %v1336_v3  ;;  %1228 = vadd.xlane.f32.xlu1 %v1227_v7 }
 0x3b8   : > { %v1338_v8 = vmul.f32 1.442695, %v1335_v6 }
 0x3ba   : > { %2937 = vpow2.f32 %v1338_v8 }
 0x3bd   : > { %v3740_v10 = vpop.eup %2935 }
 0x3be   : > { %v1340_v1 = vsel %vm919_vm9, %v3740_v10, 0.0 }
 0x3bf   : > { %v1214_v11 = vpop.xlane.xlu2 %1213  ;;  %1341 = vadd.xlane.f32.xlu2 %v1340_v1 }
 0x3c0   : > { %v3744_v13 = vpop.eup %2937  ;;  %v1218_v14 = vsub.f32 %v3715_v29, %v1214_v11 }
 0x3c1   : > { %v1343_v16 = vsel %vm919_vm9, %v3744_v13, 0.0 }
 0x3c2   : > { %v1220_v17 = vmul.f32 1.442695, %v1218_v14  ;;  %1344 = vadd.xlane.f32.xlu1 %v1343_v16 }
 0x3c4   : > { %2939 = vpow2.f32 %v1220_v17 }
 0x3ca   : > { %v2940_v18 = vpop.eup %2939 }
 0x3cb   : > { %v1224_v19 = vsel %vm919_vm9, %v2940_v18, 0.0 }
 0x3cc   : > { %1225 = vadd.xlane.f32.xlu0 %v1224_v19 }
 0x3d7   : > { %v981_v20 = vpop.xlane.xlu0 %980 }
 0x3d8   : > { %2941 = vrcp.f32 %v981_v20 }
 0x3db   : > { %1352 = vrot.lane.b32.xlu1 %v3699_v9, %s3330_s22 }
 0x3de   : > { %v2942_v21 = vpop.eup %2941 }
 0x3df   : > { %v987_v22 = vmul.f32 %v2942_v21, %v3719_v34  ;;  %v2746_v21 = vld [vmem:[%s3598_s13 + $0x8] sm:$0xff] }
 0x3e0   : > { %1373 = vrot.lane.b32.xlu0 %v3702_v58, %s3330_s22  ;;  %1449 = vmatpush.bf16.msra.mxu0 %v2746_v21  ;;  %v1503_v21 = vperm.slane %v3638_v28, 2 }
 0x3e1   : > { %v989_v23 = vpack.c.bf16 %v987_v22, %v987_v22  ;;  %v2745_v22 = vld [vmem:[%s3598_s13] sm:$0xff] }
 0x3e3   : > { %2627 = vmatmul.msk.bf16.vlgmr.msra.gmra.mxu3 %vm919_vm9, %v989_v23 }
 0x3e4   : > { %1156 = vmatpush.bf16.msra.mxu3 %v1147_v24  ;;  %1450 = vmatpush.bf16.msra.mxu0 %v2745_v22 }
 0x3e7   : > { %v1113_v25 = vpop.xlane.xlu2 %1112 }
 0x3ea   : > { %v1258_v34 = vpop.permute.xlu0 %1257 }
 0x3eb   : > { %v1263_v36 = vsel %vm999_vm10, %v1258_v34, 0 }
 0x3ef   : > { %v1110_v26 = vpop.xlane.xlu1 %1109  ;;  %v1237_v27 = vpop.permute.xlu2 %1236 }
 0x3f0   : > { %2943 = vrcp.f32 %v1110_v26  ;;  %v1242_v29 = vsel %vm999_vm10, %v1237_v27, 0 }
 0x3f1   : > { %1251 = vmatpush.bf16.msra.mxu2 %v1242_v29 }
 0x3f6   : > { %v2944_v30 = vpop.eup %2943 }
 0x3f7   : > { %v1116_v9 = vmul.f32 %v2944_v30, %v3729_v44 }
 0x3f9   : > { %v1118_v31 = vpack.c.bf16 %v1116_v9, %v1116_v9 }
 0x3fb   : > { %2631 = vmatmul.msk.bf16.vlgmr.msrb.gmra.mxu2 %vm919_vm9, %v1118_v31 }
 0x3fe   : > { %v984_v58 = vpop.xlane.xlu1 %983 }
 0x3ff   : > { %2945 = vrcp.f32 %v984_v58 }
 0x400   : > { %2947 = vrcp.f32 %v1113_v25 }
 0x405   : > { %v2946_v32 = vpop.eup %2945 }
 0x406   : > { %v988_v33 = vmul.f32 %v2946_v32, %v2932_v55  ;;  %v2948_v37 = vpop.eup %2947 }
 0x407   : > { %v1117_v38 = vmul.f32 %v2948_v37, %v3724_v41 }
 0x408   : > { %v990_v35 = vpack.c.bf16 %v988_v33, %v988_v33 }
 0x409   : > { %v1119_v39 = vpack.c.bf16 %v1117_v38, %v1117_v38  ;;  %v1427_v38 = vperm.slane %v3668_v15, 1 }
 0x40a   : > { %2628 = vmatmul.msk.bf16.vlgmr.msrb.gmra.mxu3 %vm919_vm9, %v990_v35 }
 0x40b   : > { %1272 = vmatpush.bf16.msrb.mxu3 %v1263_v36 }
 0x41a   : > { %2632 = vmatmul.msk.bf16.vlgmr.msra.gmra.mxu3 %vm919_vm9, %v1119_v39 }
 0x42a   : > { %v1229_v40 = vpop.xlane.xlu1 %1228 }
 0x42b   : > { %2949 = vrcp.f32 %v1229_v40 }
 0x431   : > { %v2950_v42 = vpop.eup %2949 }
 0x432   : > { %v1233_v43 = vmul.f32 %v2950_v42, %v2934_v0  ;;  %v1342_v49 = vpop.xlane.xlu2 %1341 }
 0x434   : > { %v1235_v44 = vpack.c.bf16 %v1233_v43, %v1233_v43 }
 0x435   : > { %v1345_v46 = vpop.xlane.xlu1 %1344 }
 0x436   : > { %2636 = vmatmul.msk.bf16.vlgmr.msrb.gmra.mxu3 %vm919_vm9, %v1235_v44 }
 0x43f   : > { %v1226_v45 = vpop.xlane.xlu0 %1225 }
 0x440   : > { %2951 = vrcp.f32 %v1226_v45 }
 0x441   : > { %2953 = vrcp.f32 %v1345_v46 }
 0x442   : > { %2955 = vrcp.f32 %v1342_v49 }
 0x446   : > { %v2952_v47 = vpop.eup %2951 }
 0x447   : > { %v1232_v48 = vmul.f32 %v2952_v47, %v2940_v18  ;;  %v2954_v51 = vpop.eup %2953 }
 0x448   : > { %v1349_v53 = vmul.f32 %v2954_v51, %v3744_v13  ;;  %v2956_v54 = vpop.eup %2955 }
 0x449   : > { %v1234_v50 = vpack.c.bf16 %v1232_v48, %v1232_v48  ;;  %v1348_v57 = vmul.f32 %v2956_v54, %v3740_v10  ;;  %v2750_v48 = vld [vmem:[%s640_s15 + $0x8] sm:$0xff] }
 0x44a   : > { %v1351_v59 = vpack.c.bf16 %v1349_v53, %v1349_v53 }
 0x44b   : > { %2635 = vmatmul.msk.bf16.vlgmr.msra.gmra.mxu2 %vm919_vm9, %v1234_v50  ;;  %v1350_v60 = vpack.c.bf16 %v1348_v57, %v1348_v57  ;;  %v2741_v57 = vld [vmem:[#allocation6] sm:$0xff] }
 0x44d   : > { %v1353_v41 = vpop.permute.xlu1 %1352 }
 0x44e   : > { %v1358_v52 = vsel %vm999_vm10, %v1353_v41, 0 }
 0x44f   : > { %1367 = vmatpush.bf16.msrb.mxu2 %v1358_v52 }
 0x452   : > { %v1374_v55 = vpop.permute.xlu0 %1373 }
 0x453   : > { %v1379_v56 = vsel %vm999_vm10, %v1374_v55, 0  ;;  %1584 = vmatpush.bf16.msra.mxu2 %v2750_v48  ;;  %vm2267_vm10 = vcmask 523264  }
 0x454   : > { %1388 = vmatpush.bf16.msra.mxu3 %v1379_v56  ;;  %v2749_v56 = vld [vmem:[%s640_s15] sm:$0xff] }
 0x457   : > { %2640 = vmatmul.msk.bf16.vlgmr.msra.gmra.mxu3 %vm919_vm9, %v1351_v59  ;;  %1585 = vmatpush.bf16.msra.mxu2 %v2749_v56  ;;  %v2742_v59 = vld [vmem:[#allocation6 + $0x8] sm:$0xff] }
 0x45b   : > { %2639 = vmatmul.msk.bf16.vlgmr.msrb.gmra.mxu2 %vm919_vm9, %v1350_v60  ;;  %v2748_v60 = vld [vmem:[%s3603_s5 + $0x8] sm:$0xff] }
 0x45c   : > { %1536 = vmatpush.bf16.msra.mxu1 %v2748_v60 }
 0x466   : > { %v1012_v61 = vpop.f32.mrf.mxu3 }
 0x46b   : > { %2675 = vmatmul.msk.bf16.vlgmr.msra.gmra.mxu2 %vm795_vm1, %v2741_v57 }
 0x46e   : > { %v1014_v62 = vpop.f32.mrf.mxu3 }
 0x47b   : > { %2676 = vmatmul.msk.bf16.gmra.mxu2 %vm795_vm1, %v2742_v59 }
 0x47e   : > { %v1137_v63 = vpop.f32.mrf.mxu2 }
 0x486   : > { %v1139_v0 = vpop.f32.mrf.mxu2 }
 0x487   : > { %v2747_v0 = vld [vmem:[%s3603_s5] sm:$0xff] }
 0x488   : > { %1537 = vmatpush.bf16.msra.mxu1 %v2747_v0 }
 0x48d   : > { %v1036_v3 = vpop.f32.mrf.mxu3 }
 0x495   : > { %v1038_v5 = vpop.f32.mrf.mxu3 }
 0x49d   : > { %v1158_v6 = vpop.f32.mrf.mxu3 }
 0x49e   : > { %v2888_v7 = vpack.i.bf16 %v1158_v6, %v1137_v63 }
 0x4a0   : > { %2889 = vrot.lane.b32.xlu0 %v2888_v7, %s3331_s2 }
 0x4a5   : > { %v1160_v8 = vpop.f32.mrf.mxu3 }
 0x4b9   : > { %v1274_v10 = vpop.f32.mrf.mxu3 }
 0x4c1   : > { %v1276_v1 = vpop.f32.mrf.mxu3 }
 0x4ce   : > { %v1253_v11 = vpop.f32.mrf.mxu2 }
 0x4cf   : > { %v2893_v13 = vpack.i.bf16 %v1274_v10, %v1253_v11 }
 0x4d1   : > { %2894 = vrot.lane.b32.xlu0 %v2893_v13, %s3332_s6 }
 0x4d6   : > { %v1255_v14 = vpop.f32.mrf.mxu2 }
 0x4da   : > { %v1390_v16 = vpop.f32.mrf.mxu3 }
 0x4de   : > { %v1369_v17 = vpop.f32.mrf.mxu2 }
 0x4df   : > { %v2898_v18 = vpack.i.bf16 %v1390_v16, %v1369_v17 }
 0x4e1   : > { %2899 = vrot.lane.b32.xlu1 %v2898_v18, %s3333_s24 }
 0x4e2   : > { %v1392_v19 = vpop.f32.mrf.mxu3 }
 0x4e6   : > { %v1371_v20 = vpop.f32.mrf.mxu2 }
 0x512   : > { %v2890_v23 = vpop.permute.xlu0 %2889 }
 0x513   : > { %v2892_v25 = vunpack.i.h.bf16 %v2890_v23  ;;  %v2891_v26 = vunpack.i.l.bf16 %v2890_v23 }
 0x515   : > { %v1419_v9 = vsel %vm919_vm9, %v1036_v3, %v2892_v25  ;;  %v1418_v31 = vsel %vm919_vm9, %v1012_v61, %v2891_v26  ;;  %v1506_v25 = vperm.slane %v3638_v28, 3 }
 0x543   : > { %v2895_v24 = vpop.permute.xlu0 %2894 }
 0x544   : > { %v2897_v27 = vunpack.i.h.bf16 %v2895_v24  ;;  %v2896_v29 = vunpack.i.l.bf16 %v2895_v24 }
 0x546   : > { %v1422_v33 = vsel %vm1420_vm11, %v1419_v9, %v2897_v27  ;;  %v1421_v34 = vsel %vm1420_vm11, %v1418_v31, %v2896_v29 }
 0x553   : > { %v2900_v30 = vpop.permute.xlu1 %2899 }
 0x554   : > { %v2902_v58 = vunpack.i.h.bf16 %v2900_v30  ;;  %v2901_v32 = vunpack.i.l.bf16 %v2900_v30 }
 0x556   : > { %v1425_v35 = vsel %vm1423_vm12, %v1422_v33, %v2902_v58  ;;  %v1424_v36 = vsel %vm1423_vm12, %v1421_v34, %v2901_v32  ;;  %v1597_v58 = vperm.slane %v3668_v15, 3  ;;  %v1587_v32 = vpop.f32.mrf.mxu2 }
 0x557   : > { %v1426_v37 = vpack.c.bf16 %v1425_v35, %v1424_v36 }
 0x558   : > { %v1598_v33 = vadd.f32 %v1597_v58, %v1587_v32 }
 0x559   : > { %2649 = vmatmul.msk.bf16.vlgmr.msra.gmra.mxu0 %vm795_vm1, %v1426_v37 }
 0x55a   : > { %v1602_v34 = vpack.c.bf16 %v1598_v33, %v1598_v33 }
 0x55c   : > { %v1625_v37 = vunpack.c.l.b16 %v1602_v34 }
 0x55e   : > { %v1589_v35 = vpop.f32.mrf.mxu2 }
 0x55f   : > { %v1599_v36 = vadd.f32 %v1597_v58, %v1589_v35 }
 0x566   : > { %v3815_v28 = vpop.f32.mrf.mxu2 }
 0x5d6   : > { %v1452_v39 = vpop.f32.mrf.mxu0 }
 0x5d7   : > { %v1453_v40 = vadd.f32 %v1452_v39, %v1427_v38 }
 0x5d9   : > { %v3784_v42 = vadd.f32 %v1453_v40, %v3618_v2 }
 0x5db   : > { %v1459_v43 = vsel %vm795_vm1, %v3784_v42, 0.0 }
 0x5dc   : > { %1460 = vadd.xlane.f32.xlu0 %v1459_v43 }
 0x5de   : > { %v1454_v44 = vpop.f32.mrf.mxu0 }
 0x5df   : > { %v1455_v45 = vadd.f32 %v1454_v44, %v1427_v38  ;;  %v1603_v38 = vpack.c.bf16 %v1599_v36, %v1599_v36  ;;  %v1600_v44 = vadd.f32 %v1597_v58, %v3815_v28 }
 0x5e1   : > { %v3789_v46 = vadd.f32 %v1455_v45, %v3622_v4  ;;  %v1626_v39 = vunpack.c.l.b16 %v1603_v38  ;;  %v1604_v45 = vpack.c.bf16 %v1600_v44, %v1600_v44 }
 0x5e3   : > { %v1462_v47 = vsel %vm795_vm1, %v3789_v46, 0.0  ;;  %v3813_v40 = vpack.c.b16 %v1626_v39, %v1625_v37 }
 0x5e4   : > { %1463 = vadd.xlane.f32.xlu2 %v1462_v47  ;;  %v3822_v47 = vpop.f32.mrf.mxu2 }
 0x5e5   : > { %v1632_v43 = vsel %vm919_vm9, %v3813_v40, 0  ;;  %v1601_v48 = vadd.f32 %v1597_v58, %v3822_v47 }
 0x5e6   : > { %1641 = vmatpush.bf16.xpose.msrb.mxu3 %v1632_v43 }
 0x5f0   : > { %1750 = vrot.lane.b32.xlu0 %v3813_v40, %s3323_s21 }
 0x64f   : > { %v1461_v49 = vpop.xlane.xlu0 %1460 }
 0x650   : > { %v1465_v2 = vmul.f32 %v1461_v49, %v3626_v12  ;;  %v1649_v49 = vunpack.c.l.b16 %v1604_v45 }
 0x652   : > { %v1467_v50 = vsub.f32 %v3784_v42, %v1465_v2  ;;  %v1605_v2 = vpack.c.bf16 %v1601_v48, %v1601_v48 }
 0x654   : > { %v1469_v41 = vmul.f32 %v1467_v50, %v1467_v50 }
 0x656   : > { %v1471_v51 = vsel %vm795_vm1, %v1469_v41, 0.0 }
 0x657   : > { %v1464_v52 = vpop.xlane.xlu2 %1463  ;;  %1472 = vadd.xlane.f32.xlu1 %v1471_v51 }
 0x658   : > { %v1466_v4 = vmul.f32 %v1464_v52, %v3626_v12  ;;  %v1514_v52 = vperm.slane %v3668_v15, 2 }
 0x65a   : > { %v1468_v53 = vsub.f32 %v3789_v46, %v1466_v4 }
 0x65c   : > { %v1470_v54 = vmul.f32 %v1468_v53, %v1468_v53 }
 0x65e   : > { %v1474_v55 = vsel %vm795_vm1, %v1470_v54, 0.0 }
 0x65f   : > { %1475 = vadd.xlane.f32.xlu2 %v1474_v55 }
 0x662   : > { %v1751_v59 = vpop.permute.xlu0 %1750 }
 0x663   : > { %v1756_v60 = vsel %vm919_vm9, %v1751_v59, 0 }
 0x6ca   : > { %v1473_v61 = vpop.xlane.xlu1 %1472 }
 0x6cb   : > { %v1477_v62 = vmul.f32 %v1473_v61, %v3626_v12 }
 0x6cd   : > { %v1479_v63 = vadd.f32 1e-05, %v1477_v62 }
 0x6cf   : > { %2957 = vrsqrt.f32 %v1479_v63  ;;  %vm1487_vm14 = vweird.f32 %v1479_v63 }
 0x6d2   : > { %v1476_v3 = vpop.xlane.xlu2 %1475 }
 0x6d3   : > { %v1478_v5 = vmul.f32 %v1476_v3, %v3626_v12 }
 0x6d5   : > { %v2958_v6 = vpop.eup %2957  ;;  %v1480_v7 = vadd.f32 1e-05, %v1478_v5 }
 0x6d6   : > { %v1482_v8 = vmul.f32 %v2958_v6, %v1479_v63  ;;  %vm1488_vm13 = vweird.f32 %v2958_v6 }
 0x6d7   : > { %2959 = vrsqrt.f32 %v1480_v7  ;;  %vm1489_vm15 = vmor %vm1487_vm14, %vm1488_vm13  ;;  %vm1497_vm2 = vweird.f32 %v1480_v7 }
 0x6d8   : > { %v1483_v10 = vmul.f32 %v2958_v6, %v1482_v8 }
 0x6da   : > { %v1484_v1 = vmul.f32 0.5, %v1483_v10 }
 0x6dc   : > { %v1485_v11 = vsub.f32 1.5, %v1484_v1 }
 0x6dd   : > { %v2960_v13 = vpop.eup %2959 }
 0x6de   : > { %v1486_v14 = vmul.f32 %v2958_v6, %v1485_v11  ;;  %v1492_v16 = vmul.f32 %v2960_v13, %v1480_v7  ;;  %vm1498_vm0 = vweird.f32 %v2960_v13 }
 0x6df   : > { %vm1499_vm3 = vmor %vm1497_vm2, %vm1498_vm0 }
 0x6e0   : > { %v1493_v17 = vmul.f32 %v2960_v13, %v1492_v16  ;;  %v1490_v18 = vsel %vm1489_vm15, %v2958_v6, %v1486_v14  ;;  %v1606_v6 = vperm.slane %v3668_v15, 4 }
 0x6e1   : > { %v1501_v22 = vmul.f32 %v1490_v18, %v1467_v50  ;;  %v1650_v50 = vunpack.c.l.b16 %v1605_v2 }
 0x6e2   : > { %v1494_v19 = vmul.f32 0.5, %v1493_v17 }
 0x6e3   : > { %v1504_v26 = vmul.f32 %v1503_v21, %v1501_v22  ;;  %v1651_v41 = vpack.c.b16 %v1650_v50, %v1649_v49 }
 0x6e4   : > { %v1495_v20 = vsub.f32 1.5, %v1494_v19 }
 0x6e5   : > { %v1507_v30 = vadd.f32 %v1506_v25, %v1504_v26  ;;  %v1656_v51 = vsel %vm919_vm9, %v1651_v41, 0 }
 0x6e6   : > { %v1496_v23 = vmul.f32 %v2960_v13, %v1495_v20  ;;  %1665 = vmatpush.bf16.xpose.msrb.mxu0 %v1656_v51 }
 0x6e8   : > { %v1500_v24 = vsel %vm1499_vm3, %v2960_v13, %v1496_v23 }
 0x6e9   : > { %v1502_v27 = vmul.f32 %v1500_v24, %v1468_v53 }
 0x6eb   : > { %v1505_v29 = vmul.f32 %v1503_v21, %v1502_v27 }
 0x6ed   : > { %v1508_v9 = vadd.f32 %v1506_v25, %v1505_v29 }
 0x6ee   : > { %1765 = vmatpush.bf16.xpose.msra.mxu0 %v1756_v60 }
 0x6ef   : > { %v1509_v31 = vpack.c.bf16 %v1508_v9, %v1507_v30 }
 0x6f1   : > { %2658 = vmatmul.msk.bf16.vlgmr.msra.gmra.mxu1 %vm795_vm1, %v1509_v31 }
 0x76e   : > { %v1539_v4 = vpop.f32.mrf.mxu1 }
 0x76f   : > { %v1540_v53 = vadd.f32 %v1539_v4, %v1514_v52 }
 0x771   : > { %v1544_v54 = vpack.c.bf16 %v1540_v53, %v1540_v53 }
 0x773   : > { %2677 = vmatmul.msk.bf16.vlgmr.msrb.gmra.mxu3 %vm919_vm9, %v1544_v54  ;;  %v1746_v7 = vunpack.c.l.b16 %v1544_v54 }
 0x775   : > { %v1747_v8 = vpack.c.b16 %v1746_v7, %v1746_v7 }
 0x776   : > { %v1541_v55 = vpop.f32.mrf.mxu1 }
 0x777   : > { %v1542_v56 = vadd.f32 %v1541_v55, %v1514_v52 }
 0x779   : > { %v1545_v57 = vpack.c.bf16 %v1542_v56, %v1542_v56 }
 0x77b   : > { %2678 = vmatmul.msk.bf16.vlgmr.msrb.gmra.mxu0 %vm919_vm9, %v1545_v57  ;;  %v1772_v10 = vunpack.c.l.b16 %v1545_v57 }
 0x77d   : > { %v1773_v1 = vpack.c.b16 %v1772_v10, %v1772_v10 }
 0x7f6   : > { %v1643_v61 = vpop.f32.mrf.mxu3 }
 0x7f7   : > { %v1671_v62 = vmul.f32 0.35355338, %v1643_v61 }
 0x7f8   : > { %v1667_v63 = vpop.f32.mrf.mxu0 }
 0x7f9   : > { %v1673_v0 = vsel %vm1420_vm11, %v1671_v62, -inf  ;;  %v1672_v11 = vmul.f32 0.35355338, %v1667_v63 }
 0x7fa   : > { %1674 = vmax.xlane.f32.xlu2 %v1673_v0 }
 0x7fb   : > { %v1676_v13 = vsel %vm1420_vm11, %v1672_v11, -inf }
 0x7fe   : > { %v1645_v3 = vpop.f32.mrf.mxu3 }
 0x800   : > { %v1669_v5 = vpop.f32.mrf.mxu0 }
 0x812   : > { %1608 = vrot.lane.b32.xlu2 %v1606_v6, %s3319_s23 }
 0x81a   : > { %1776 = vrot.lane.b32.xlu2 %v1651_v41, %s3323_s21 }
 0x822   : > { %1748 = vrot.lane.b32.xlu2 %v1747_v8, %s3323_s21 }
 0x82a   : > { %1774 = vrot.lane.b32.xlu2 %v1773_v1, %s3323_s21 }
 0x832   : > { %1861 = vrot.lane.b32.xlu2 %v1747_v8, %s3322_s14 }
 0x83a   : > { %1996 = vrot.lane.b32.xlu2 %v1651_v41, %s3326_s8 }
 0x863   : > { %1677 = vmax.xlane.f32.xlu2 %v1676_v13 }
 0x86d   : > { %v1675_v15 = vpop.xlane.xlu2 %1674 }
 0x86e   : > { %v1679_v14 = vsub.f32 %v1671_v62, %v1675_v15 }
 0x870   : > { %v1681_v16 = vmul.f32 1.442695, %v1679_v14 }
 0x872   : > { %2961 = vpow2.f32 %v1681_v16 }
 0x875   : > { %v3839_v17 = vpop.permute.xlu2 %1608 }
 0x876   : > { %v1611_v18 = vadd.f32 %v3839_v17, %v1587_v32  ;;  %v1612_v19 = vadd.f32 %v3839_v17, %v1589_v35 }
 0x878   : > { %v2962_v20 = vpop.eup %2961  ;;  %v1615_v21 = vpack.c.bf16 %v1611_v18, %v1611_v18  ;;  %v1616_v22 = vpack.c.bf16 %v1612_v19, %v1612_v19 }
 0x879   : > { %v1685_v23 = vsel %vm1420_vm11, %v2962_v20, 0.0 }
 0x87a   : > { %v1699_v24 = vunpack.c.l.b16 %v1615_v21  ;;  %v1700_v25 = vunpack.c.l.b16 %v1616_v22  ;;  %1686 = vadd.xlane.f32.xlu0 %v1685_v23  ;;  %v1613_v21 = vadd.f32 %v3839_v17, %v3815_v28  ;;  %v1614_v22 = vadd.f32 %v3839_v17, %v3822_v47 }
 0x87c   : > { %v3844_v26 = vpack.c.b16 %v1700_v25, %v1699_v24  ;;  %v1617_v24 = vpack.c.bf16 %v1613_v21, %v1613_v21  ;;  %v1618_v25 = vpack.c.bf16 %v1614_v22, %v1614_v22 }
 0x87d   : > { %v1777_v27 = vpop.permute.xlu2 %1776 }
 0x87e   : > { %1702 = vrot.lane.b32.xlu1 %v3844_v26, %s3321_s11  ;;  %v1782_v32 = vsel %vm919_vm9, %v1777_v27, 0 }
 0x885   : > { %v1749_v29 = vpop.permute.xlu2 %1748 }
 0x886   : > { %1886 = vrot.lane.b32.xlu1 %v1651_v41, %s3322_s14  ;;  %2681 = vmatmul.msk.bf16.vlgmr.msra.gmra.mxu0 %vm919_vm9, %v1749_v29  ;;  %v1723_v29 = vunpack.c.l.b16 %v1617_v24 }
 0x88d   : > { %v1775_v30 = vpop.permute.xlu2 %1774 }
 0x88e   : > { %1863 = vrot.lane.b32.xlu0 %v3813_v40, %s3322_s14  ;;  %1973 = vrot.lane.b32.xlu1 %v3813_v40, %s3326_s8 }
 0x895   : > { %v1862_v9 = vpop.permute.xlu2 %1861 }
 0x896   : > { %1884 = vrot.lane.b32.xlu0 %v1773_v1, %s3322_s14  ;;  %1994 = vrot.lane.b32.xlu1 %v1773_v1, %s3326_s8 }
 0x89d   : > { %v1997_v33 = vpop.permute.xlu2 %1996 }
 0x89e   : > { %1971 = vrot.lane.b32.xlu0 %v1747_v8, %s3326_s8  ;;  %v2002_v51 = vsel %vm919_vm9, %v1997_v33, 0 }
 0x8d6   : > { %v1678_v39 = vpop.xlane.xlu2 %1677 }
 0x8d7   : > { %v1680_v40 = vsub.f32 %v1672_v11, %v1678_v39 }
 0x8d9   : > { %v1683_v45 = vmul.f32 1.442695, %v1680_v40 }
 0x8ed   : > { %v1687_v31 = vpop.xlane.xlu0 %1686 }
 0x8ee   : > { %2963 = vrcp.f32 %v1687_v31 }
 0x8ef   : > { %2965 = vpow2.f32 %v1683_v45 }
 0x8f0   : > { %v1703_v58 = vpop.permute.xlu1 %1702 }
 0x8f1   : > { %1715 = vmatpush.bf16.msrb.mxu1 %v1703_v58 }
 0x8f4   : > { %v2964_v34 = vpop.eup %2963 }
 0x8f5   : > { %1791 = vmatpush.bf16.xpose.msra.mxu1 %v1782_v32  ;;  %v1693_v35 = vmul.f32 %v2964_v34, %v2962_v20  ;;  %v3866_v52 = vpop.eup %2965 }
 0x8f6   : > { %v1688_v54 = vsel %vm1420_vm11, %v3866_v52, 0.0 }
 0x8f7   : > { %v1695_v36 = vpack.c.bf16 %v1693_v35, %v1693_v35 }
 0x8f8   : > { %v1887_v37 = vpop.permute.xlu1 %1886 }
 0x8f9   : > { %v1892_v38 = vsel %vm919_vm9, %v1887_v37, 0  ;;  %2679 = vmatmul.msk.bf16.vlgmr.msrb.gmra.mxu1 %vm1420_vm11, %v1695_v36 }
 0x8fd   : > { %1901 = vmatpush.bf16.xpose.msrb.mxu1 %v1892_v38 }
 0x900   : > { %v1864_v43 = vpop.permute.xlu0 %1863  ;;  %v1974_v44 = vpop.permute.xlu1 %1973 }
 0x901   : > { %v1869_v48 = vsel %vm919_vm9, %v1864_v43, 0  ;;  %v1979_v49 = vsel %vm919_vm9, %v1974_v44, 0 }
 0x902   : > { %1878 = vmatpush.bf16.xpose.msrb.mxu0 %v1869_v48 }
 0x903   : > { %v1767_v2 = vpop.f32.mrf.mxu0 }
 0x904   : > { %v1797_v50 = vmul.f32 0.35355338, %v1767_v2 }
 0x906   : > { %v1799_v41 = vsel %vm1420_vm11, %v1797_v50, -inf }
 0x907   : > { %1800 = vmax.xlane.f32.xlu0 %v1799_v41 }
 0x908   : > { %v1885_v53 = vpop.permute.xlu0 %1884  ;;  %v1995_v56 = vpop.permute.xlu1 %1994 }
 0x909   : > { %2682 = vmatmul.msk.bf16.vlgmr.msra.gmra.mxu1 %vm919_vm9, %v1775_v30  ;;  %2685 = vmatmul.msk.bf16.vlgmr.msrb.gmra.mxu0 %vm919_vm9, %v1862_v9  ;;  %v1724_v30 = vunpack.c.l.b16 %v1618_v25 }
 0x90a   : > { %1988 = vmatpush.bf16.xpose.msra.mxu0 %v1979_v49  ;;  %2011 = vmatpush.bf16.xpose.msra.mxu1 %v2002_v51 }
 0x90b   : > { %v1769_v4 = vpop.f32.mrf.mxu0  ;;  %v3886_v9 = vpack.c.b16 %v1724_v30, %v1723_v29 }
 0x90f   : > { %1689 = vadd.xlane.f32.xlu0 %v1688_v54 }
 0x910   : > { %v1972_v55 = vpop.permute.xlu0 %1971 }
 0x919   : > { %2686 = vmatmul.msk.bf16.vlgmr.msrb.gmra.mxu1 %vm919_vm9, %v1885_v53  ;;  %2689 = vmatmul.msk.bf16.vlgmr.msra.gmra.mxu0 %vm919_vm9, %v1972_v55 }
 0x929   : > { %2690 = vmatmul.msk.bf16.vlgmr.msra.gmra.mxu1 %vm919_vm9, %v1995_v56 }
 0x976   : > { %v3873_v57 = vpop.f32.mrf.mxu1 }
 0x97a   : > { %v1801_v59 = vpop.xlane.xlu0 %1800 }
 0x97b   : > { %v1805_v61 = vsub.f32 %v1797_v50, %v1801_v59 }
 0x97d   : > { %v1807_v62 = vmul.f32 1.442695, %v1805_v61 }
 0x97e   : > { %v1719_v60 = vpop.f32.mrf.mxu1 }
 0x97f   : > { %2967 = vpow2.f32 %v1807_v62 }
 0x982   : > { %v1690_v39 = vpop.xlane.xlu0 %1689 }
 0x985   : > { %v2968_v6 = vpop.eup %2967 }
 0x986   : > { %v1793_v63 = vpop.f32.mrf.mxu1  ;;  %v1880_v0 = vpop.f32.mrf.mxu0  ;;  %v1811_v10 = vsel %vm1420_vm11, %v2968_v6, 0.0 }
 0x987   : > { %v1907_v3 = vmul.f32 0.35355338, %v1880_v0  ;;  %v1798_v18 = vmul.f32 0.35355338, %v1793_v63 }
 0x989   : > { %v1909_v5 = vsel %vm1420_vm11, %v1907_v3, -inf  ;;  %v1802_v23 = vsel %vm1420_vm11, %v1798_v18, -inf }
 0x98a   : > { %1910 = vmax.xlane.f32.xlu2 %v1909_v5 }
 0x98e   : > { %v1795_v7 = vpop.f32.mrf.mxu1  ;;  %v1882_v8 = vpop.f32.mrf.mxu0 }
 0x992   : > { %1812 = vadd.xlane.f32.xlu2 %v1811_v10 }
 0x996   : > { %v1903_v1 = vpop.f32.mrf.mxu1  ;;  %v1990_v11 = vpop.f32.mrf.mxu0 }
 0x997   : > { %v1908_v13 = vmul.f32 0.35355338, %v1903_v1  ;;  %v2017_v15 = vmul.f32 0.35355338, %v1990_v11 }
 0x999   : > { %v1912_v14 = vsel %vm1420_vm11, %v1908_v13, -inf  ;;  %v2019_v16 = vsel %vm1420_vm11, %v2017_v15, -inf }
 0x99a   : > { %1913 = vmax.xlane.f32.xlu0 %v1912_v14  ;;  %2020 = vmax.xlane.f32.xlu1 %v2019_v16 }
 0x99e   : > { %v1905_v19 = vpop.f32.mrf.mxu1  ;;  %v1992_v20 = vpop.f32.mrf.mxu0 }
 0x9a2   : > { %1803 = vmax.xlane.f32.xlu1 %v1802_v23 }
 0x9a6   : > { %v2013_v27 = vpop.f32.mrf.mxu1 }
 0x9a7   : > { %v2018_v28 = vmul.f32 0.35355338, %v2013_v27 }
 0x9a9   : > { %v2022_v47 = vsel %vm1420_vm11, %v2018_v28, -inf }
 0x9aa   : > { %1823 = vrot.lane.b32.xlu2 %v3844_v26, %s3320_s26 }
 0x9ae   : > { %v2015_v31 = vpop.f32.mrf.mxu1  ;;  %1842 = vrot.lane.b32.xlu0 %v3886_v9, %s3320_s26 }
 0x9b2   : > { %1933 = vrot.lane.b32.xlu2 %v3844_v26, %s3325_s9 }
 0x9bb   : > { %1726 = vrot.lane.b32.xlu1 %v3886_v9, %s3321_s11 }
 0x9db   : > { %2023 = vmax.xlane.f32.xlu2 %v2022_v47 }
 0x9f3   : > { %1952 = vrot.lane.b32.xlu2 %v3886_v9, %s3325_s9 }
 0x9fd   : > { %v1911_v17 = vpop.xlane.xlu2 %1910 }
 0x9fe   : > { %v1915_v58 = vsub.f32 %v1907_v3, %v1911_v17 }
 0xa00   : > { %v1917_v32 = vmul.f32 1.442695, %v1915_v58 }
 0xa02   : > { %2969 = vpow2.f32 %v1917_v32 }
 0xa05   : > { %v1813_v33 = vpop.xlane.xlu2 %1812 }
 0xa06   : > { %2971 = vrcp.f32 %v1813_v33 }
 0xa08   : > { %v2970_v34 = vpop.eup %2969 }
 0xa09   : > { %v1921_v35 = vsel %vm1420_vm11, %v2970_v34, 0.0 }
 0xa0a   : > { %1922 = vadd.xlane.f32.xlu1 %v1921_v35 }
 0xa0c   : > { %v2972_v36 = vpop.eup %2971 }
 0xa0d   : > { %v1819_v37 = vmul.f32 %v2972_v36, %v2968_v6  ;;  %v1824_v38 = vpop.permute.xlu2 %1823  ;;  %v2021_v40 = vpop.xlane.xlu1 %2020 }
 0xa0e   : > { %1836 = vmatpush.bf16.msrb.mxu2 %v1824_v38  ;;  %v2025_v44 = vsub.f32 %v2017_v15, %v2021_v40  ;;  %v1914_v49 = vpop.xlane.xlu0 %1913 }
 0xa0f   : > { %v1821_v43 = vpack.c.bf16 %v1819_v37, %v1819_v37  ;;  %v1916_v51 = vsub.f32 %v1908_v13, %v1914_v49 }
 0xa10   : > { %v2027_v45 = vmul.f32 1.442695, %v2025_v44 }
 0xa11   : > { %2683 = vmatmul.msk.bf16.vlgmr.msrb.gmra.mxu2 %vm1420_vm11, %v1821_v43  ;;  %v1919_v54 = vmul.f32 1.442695, %v1916_v51 }
 0xa12   : > { %2973 = vpow2.f32 %v2027_v45 }
 0xa15   : > { %v1934_v48 = vpop.permute.xlu2 %1933  ;;  %v1804_v2 = vpop.xlane.xlu1 %1803 }
 0xa16   : > { %1946 = vmatpush.bf16.msra.mxu2 %v1934_v48  ;;  %v1806_v50 = vsub.f32 %v1798_v18, %v1804_v2 }
 0xa18   : > { %v2974_v41 = vpop.eup %2973  ;;  %v1809_v4 = vmul.f32 1.442695, %v1806_v50  ;;  %v2752_v50 = vld [vmem:[%s650_s18 + $0x8] sm:$0xff] }
 0xa19   : > { %v2031_v53 = vsel %vm1420_vm11, %v2974_v41, 0.0  ;;  %2134 = vmatpush.bf16.msrb.mxu0 %v2752_v50 }
 0xa1a   : > { %2975 = vpow2.f32 %v1809_v4 }
 0xa1b   : > { %2977 = vpow2.f32 %v1919_v54 }
 0xa1c   : > { %2032 = vadd.xlane.f32.xlu2 %v2031_v53  ;;  %2979 = vrcp.f32 %v1690_v39 }
 0xa20   : > { %v2976_v55 = vpop.eup %2975  ;;  %v1843_v0 = vpop.permute.xlu0 %1842 }
 0xa21   : > { %v1814_v56 = vsel %vm1420_vm11, %v2976_v55, 0.0  ;;  %v2978_v59 = vpop.eup %2977 }
 0xa22   : > { %1815 = vadd.xlane.f32.xlu0 %v1814_v56  ;;  %v2980_v60 = vpop.eup %2979  ;;  %v1924_v61 = vsel %vm1420_vm11, %v2978_v59, 0.0 }
 0xa23   : > { %v1694_v62 = vmul.f32 %v2980_v60, %v3866_v52 }
 0xa25   : > { %v1696_v3 = vpack.c.bf16 %v1694_v62, %v1694_v62 }
 0xa2a   : > { %1925 = vadd.xlane.f32.xlu0 %v1924_v61 }
 0xa2d   : > { %v1727_v63 = vpop.permute.xlu1 %1726 }
 0xa2e   : > { %1739 = vmatpush.bf16.msra.mxu3 %v1727_v63 }
 0xa31   : > { %2680 = vmatmul.msk.bf16.vlgmr.msra.gmra.mxu3 %vm1420_vm11, %v1696_v3 }
 0xa32   : > { %1855 = vmatpush.bf16.msrb.mxu3 %v1843_v0 }
 0xa3e   : > { %2043 = vrot.lane.b32.xlu0 %v3844_v26, %s3324_s20 }
 0xa4e   : > { %v2024_v5 = vpop.xlane.xlu2 %2023 }
 0xa4f   : > { %v2026_v6 = vsub.f32 %v2018_v28, %v2024_v5 }
 0xa51   : > { %v2029_v7 = vmul.f32 1.442695, %v2026_v6 }
 0xa53   : > { %2981 = vpow2.f32 %v2029_v7 }
 0xa56   : > { %v1953_v8 = vpop.permute.xlu2 %1952 }
 0xa57   : > { %1965 = vmatpush.bf16.msra.mxu3 %v1953_v8  ;;  %v3930_v8 = vld [vmem:[%s3615_s29 + $0x8] sm:$0xff] }
 0xa59   : > { %v2982_v10 = vpop.eup %2981 }
 0xa5a   : > { %v2034_v52 = vsel %vm1420_vm11, %v2982_v10, 0.0 }
 0xa5b   : > { %2035 = vadd.xlane.f32.xlu1 %v2034_v52 }
 0xa74   : > { %2062 = vrot.lane.b32.xlu1 %v3886_v9, %s3324_s20 }
 0xa7d   : > { %v1923_v1 = vpop.xlane.xlu1 %1922 }
 0xa7e   : > { %2983 = vrcp.f32 %v1923_v1 }
 0xa84   : > { %v2984_v11 = vpop.eup %2983 }
 0xa85   : > { %v1929_v13 = vmul.f32 %v2984_v11, %v2970_v34 }
 0xa87   : > { %v1931_v15 = vpack.c.bf16 %v1929_v13, %v1929_v13 }
 0xa89   : > { %2687 = vmatmul.msk.bf16.vlgmr.msra.gmra.mxu2 %vm1420_vm11, %v1931_v15 }
 0xa8f   : > { %v2033_v22 = vpop.xlane.xlu2 %2032 }
 0xa94   : > { %v1838_v26 = vpop.f32.mrf.mxu2 }
 0xa95   : > { %v1816_v14 = vpop.xlane.xlu0 %1815 }
 0xa96   : > { %2985 = vrcp.f32 %v1816_v14 }
 0xa9c   : > { %v1840_v16 = vpop.f32.mrf.mxu2  ;;  %v2986_v18 = vpop.eup %2985 }
 0xa9d   : > { %v1820_v19 = vmul.f32 %v2986_v18, %v2976_v55  ;;  %v1926_v21 = vpop.xlane.xlu0 %1925 }
 0xa9e   : > { %2987 = vrcp.f32 %v1926_v21 }
 0xa9f   : > { %v1822_v20 = vpack.c.bf16 %v1820_v19, %v1820_v19  ;;  %2989 = vrcp.f32 %v2033_v22 }
 0xaa1   : > { %2684 = vmatmul.msk.bf16.vlgmr.msrb.gmra.mxu3 %vm1420_vm11, %v1822_v20 }
 0xaa4   : > { %v2988_v23 = vpop.eup %2987 }
 0xaa5   : > { %v2990_v24 = vpop.eup %2989  ;;  %v1930_v25 = vmul.f32 %v2988_v23, %v2978_v59 }
 0xaa6   : > { %v2039_v27 = vmul.f32 %v2990_v24, %v2974_v41  ;;  %v2751_v41 = vld [vmem:[%s650_s18] sm:$0xff] }
 0xaa7   : > { %v1932_v29 = vpack.c.bf16 %v1930_v25, %v1930_v25  ;;  %2135 = vmatpush.bf16.msrb.mxu0 %v2751_v41  ;;  %v2754_v25 = vld [vmem:[%s660_s27 + $0x8] sm:$0xff] }
 0xaa8   : > { %v2041_v9 = vpack.c.bf16 %v2039_v27, %v2039_v27  ;;  %2223 = vmatpush.bf16.msrb.mxu1 %v2754_v25 }
 0xab0   : > { %v2044_v30 = vpop.permute.xlu0 %2043 }
 0xab1   : > { %2688 = vmatmul.msk.bf16.vlgmr.msra.gmra.mxu3 %vm1420_vm11, %v1932_v29  ;;  %2056 = vmatpush.bf16.msrb.mxu2 %v2044_v30 }
 0xab4   : > { %v1741_v31 = vpop.f32.mrf.mxu3  ;;  %2691 = vmatmul.msk.bf16.vlgmr.msrb.gmra.mxu2 %vm1420_vm11, %v2041_v9  ;;  %v2753_v9 = vld [vmem:[%s660_s27] sm:$0xff] }
 0xab5   : > { %2224 = vmatpush.bf16.msrb.mxu1 %v2753_v9 }
 0xabc   : > { %v1743_v28 = vpop.f32.mrf.mxu3 }
 0xace   : > { %v2036_v47 = vpop.xlane.xlu1 %2035 }
 0xacf   : > { %2991 = vrcp.f32 %v2036_v47 }
 0xad5   : > { %v2992_v17 = vpop.eup %2991 }
 0xad6   : > { %v2040_v58 = vmul.f32 %v2992_v17, %v2982_v10  ;;  %v2112_v10 = vperm.slane %v3930_v8, 5 }
 0xad8   : > { %v2042_v33 = vpack.c.bf16 %v2040_v58, %v2040_v58 }
 0xae6   : > { %v2063_v32 = vpop.permute.xlu1 %2062 }
 0xae7   : > { %2075 = vmatpush.bf16.msrb.mxu3 %v2063_v32 }
 0xaea   : > { %2692 = vmatmul.msk.bf16.vlgmr.msrb.gmra.mxu3 %vm1420_vm11, %v2042_v33 }
 0xb0c   : > { %v1948_v34 = vpop.f32.mrf.mxu2 }
 0xb14   : > { %v1950_v35 = vpop.f32.mrf.mxu2 }
 0xb24   : > { %v1857_v36 = vpop.f32.mrf.mxu3 }
 0xb25   : > { %v2903_v37 = vpack.i.bf16 %v1857_v36, %v1838_v26 }
 0xb27   : > { %2904 = vrot.lane.b32.xlu2 %v2903_v37, %s3331_s2 }
 0xb2c   : > { %v1859_v38 = vpop.f32.mrf.mxu3 }
 0xb34   : > { %v1967_v39 = vpop.f32.mrf.mxu3 }
 0xb35   : > { %v2908_v40 = vpack.i.bf16 %v1967_v39, %v1948_v34 }
 0xb37   : > { %2909 = vrot.lane.b32.xlu0 %v2908_v40, %s3332_s6  ;;  %v2058_v43 = vpop.f32.mrf.mxu2 }
 0xb3c   : > { %v1969_v44 = vpop.f32.mrf.mxu3 }
 0xb3d   : > { %v2998_v44 = vld [vmem:[%s3615_s29] sm:$0xff] }
 0xb3e   : > { %v2191_v50 = vperm.slane %v2998_v44, 5 }
 0xb3f   : > { %v2060_v45 = vpop.f32.mrf.mxu2 }
 0xb40   : > { %v2188_v45 = vperm.slane %v2998_v44, 4 }
 0xb6d   : > { %v2077_v48 = vpop.f32.mrf.mxu3 }
 0xb6e   : > { %v2913_v49 = vpack.i.bf16 %v2077_v48, %v2058_v43 }
 0xb70   : > { %2914 = vrot.lane.b32.xlu1 %v2913_v49, %s3333_s24 }
 0xb75   : > { %v2079_v2 = vpop.f32.mrf.mxu3 }
 0xb81   : > { %v2905_v51 = vpop.permute.xlu2 %2904 }
 0xb82   : > { %v2907_v53 = vunpack.i.h.bf16 %v2905_v51  ;;  %v2906_v54 = vunpack.i.l.bf16 %v2905_v51 }
 0xb84   : > { %v2106_v60 = vsel %vm919_vm9, %v1741_v31, %v2907_v53  ;;  %v2105_v61 = vsel %vm919_vm9, %v3873_v57, %v2906_v54 }
 0xba9   : > { %v2910_v4 = vpop.permute.xlu0 %2909 }
 0xbaa   : > { %v2912_v55 = vunpack.i.h.bf16 %v2910_v4  ;;  %v2911_v56 = vunpack.i.l.bf16 %v2910_v4 }
 0xbac   : > { %v2108_v0 = vsel %vm1420_vm11, %v2106_v60, %v2912_v55  ;;  %v2107_v3 = vsel %vm1420_vm11, %v2105_v61, %v2911_v56  ;;  %v2758_v56 = vld [vmem:[%s3608_s0 + $0x18] sm:$0xff]  ;;  %v2756_v60 = vld [vmem:[%s3608_s0 + $0x8] sm:$0xff]  ;;  %v2755_v61 = vld [vmem:[%s3608_s0] sm:$0xff] }
 0xbad   : > { %2275 = vmatpush.bf16.msra.mxu2 %v2758_v56 }
 0xbe2   : > { %v2915_v59 = vpop.permute.xlu1 %2914 }
 0xbe3   : > { %v2917_v62 = vunpack.i.h.bf16 %v2915_v59  ;;  %v2916_v63 = vunpack.i.l.bf16 %v2915_v59  ;;  %v2757_v59 = vld [vmem:[%s3608_s0 + $0x10] sm:$0xff]  ;;  %s4069_s0 = sld [smem:[#allocation36_spill]] (!%p2728_p3) }
 0xbe4   : > { %2276 = vmatpush.bf16.msra.mxu2 %v2757_v59 }
 0xbe5   : > { %v2110_v5 = vsel %vm1423_vm12, %v2108_v0, %v2917_v62  ;;  %v2109_v6 = vsel %vm1423_vm12, %v2107_v3, %v2916_v63  ;;  %v2918_v63 = vld [vmem:[%s773_s1] ss:$0 sm:$0xff] }
 0xbe6   : > { %v2111_v7 = vpack.c.bf16 %v2110_v5, %v2109_v6 }
 0xbe8   : > { %2701 = vmatmul.msk.bf16.vlgmr.msrb.gmra.mxu0 %vm795_vm1, %v2111_v7  ;;  %2277 = vmatpush.bf16.msra.mxu2 %v2756_v60 }
 0xbec   : > { %2278 = vmatpush.bf16.msra.mxu2 %v2755_v61 }
 0xc65   : > { %v2137_v52 = vpop.f32.mrf.mxu0 }
 0xc66   : > { %v2138_v1 = vadd.f32 %v2137_v52, %v2112_v10  ;;  %v2242_v52 = vperm.slane %v3930_v8, 6 }
 0xc68   : > { %v3934_v57 = vadd.f32 %v2138_v1, %v3784_v42 }
 0xc6a   : > { %v2144_v11 = vsel %vm795_vm1, %v3934_v57, 0.0 }
 0xc6b   : > { %2145 = vadd.xlane.f32.xlu0 %v2144_v11 }
 0xc6d   : > { %v2139_v13 = vpop.f32.mrf.mxu0 }
 0xc6e   : > { %v2140_v15 = vadd.f32 %v2139_v13, %v2112_v10 }
 0xc70   : > { %v3939_v26 = vadd.f32 %v2140_v15, %v3789_v46 }
 0xc72   : > { %v2147_v14 = vsel %vm795_vm1, %v3939_v26, 0.0 }
 0xc73   : > { %2148 = vadd.xlane.f32.xlu1 %v2147_v14 }
 0xcde   : > { %v2146_v16 = vpop.xlane.xlu0 %2145 }
 0xcdf   : > { %v2150_v18 = vmul.f32 %v2146_v16, %v3626_v12 }
 0xce1   : > { %v2152_v42 = vsub.f32 %v3934_v57, %v2150_v18 }
 0xce3   : > { %v2154_v19 = vmul.f32 %v2152_v42, %v2152_v42 }
 0xce5   : > { %v2156_v20 = vsel %vm795_vm1, %v2154_v19, 0.0 }
 0xce6   : > { %v2149_v21 = vpop.xlane.xlu1 %2148  ;;  %2157 = vadd.xlane.f32.xlu2 %v2156_v20 }
 0xce7   : > { %v2151_v22 = vmul.f32 %v2149_v21, %v3626_v12 }
 0xce9   : > { %v2153_v46 = vsub.f32 %v3939_v26, %v2151_v22 }
 0xceb   : > { %v2155_v23 = vmul.f32 %v2153_v46, %v2153_v46 }
 0xced   : > { %v2159_v24 = vsel %vm795_vm1, %v2155_v23, 0.0 }
 0xcee   : > { %2160 = vadd.xlane.f32.xlu0 %v2159_v24 }
 0xd59   : > { %v2158_v27 = vpop.xlane.xlu2 %2157 }
 0xd5a   : > { %v2162_v29 = vmul.f32 %v2158_v27, %v3626_v12 }
 0xd5c   : > { %v2164_v30 = vadd.f32 1e-05, %v2162_v29 }
 0xd5e   : > { %2993 = vrsqrt.f32 %v2164_v30  ;;  %vm2172_vm5 = vweird.f32 %v2164_v30 }
 0xd61   : > { %v2161_v31 = vpop.xlane.xlu0 %2160 }
 0xd62   : > { %v2163_v28 = vmul.f32 %v2161_v31, %v3626_v12 }
 0xd64   : > { %v2994_v47 = vpop.eup %2993  ;;  %v2165_v17 = vadd.f32 1e-05, %v2163_v28 }
 0xd65   : > { %v2167_v58 = vmul.f32 %v2994_v47, %v2164_v30  ;;  %vm2173_vm4 = vweird.f32 %v2994_v47 }
 0xd66   : > { %2995 = vrsqrt.f32 %v2165_v17  ;;  %vm2174_vm6 = vmor %vm2172_vm5, %vm2173_vm4  ;;  %vm2182_vm8 = vweird.f32 %v2165_v17 }
 0xd67   : > { %v2168_v32 = vmul.f32 %v2994_v47, %v2167_v58 }
 0xd69   : > { %v2169_v33 = vmul.f32 0.5, %v2168_v32 }
 0xd6b   : > { %v2170_v34 = vsub.f32 1.5, %v2169_v33 }
 0xd6c   : > { %v2996_v35 = vpop.eup %2995 }
 0xd6d   : > { %v2171_v36 = vmul.f32 %v2994_v47, %v2170_v34  ;;  %v2177_v37 = vmul.f32 %v2996_v35, %v2165_v17  ;;  %vm2183_vm7 = vweird.f32 %v2996_v35 }
 0xd6e   : > { %vm2184_vm9 = vmor %vm2182_vm8, %vm2183_vm7 }
 0xd6f   : > { %v2178_v38 = vmul.f32 %v2996_v35, %v2177_v37  ;;  %v2175_v39 = vsel %vm2174_vm6, %v2994_v47, %v2171_v36 }
 0xd70   : > { %v2186_v48 = vmul.f32 %v2175_v39, %v2152_v42 }
 0xd71   : > { %v2179_v40 = vmul.f32 0.5, %v2178_v38 }
 0xd72   : > { %v2189_v41 = vmul.f32 %v2188_v45, %v2186_v48 }
 0xd73   : > { %v2180_v43 = vsub.f32 1.5, %v2179_v40 }
 0xd74   : > { %v2192_v53 = vadd.f32 %v2191_v50, %v2189_v41 }
 0xd75   : > { %v2181_v49 = vmul.f32 %v2996_v35, %v2180_v43 }
 0xd77   : > { %v2185_v2 = vsel %vm2184_vm9, %v2996_v35, %v2181_v49 }
 0xd78   : > { %v2187_v51 = vmul.f32 %v2185_v2, %v2153_v46 }
 0xd7a   : > { %v2190_v4 = vmul.f32 %v2188_v45, %v2187_v51 }
 0xd7c   : > { %v2193_v54 = vadd.f32 %v2191_v50, %v2190_v4 }
 0xd7e   : > { %v2194_v55 = vpack.c.bf16 %v2193_v54, %v2192_v53 }
 0xd80   : > { %2710 = vmatmul.msk.bf16.vlgmr.msrb.gmra.mxu1 %vm795_vm1, %v2194_v55 }
 0xdfd   : > { %v2226_v62 = vpop.f32.mrf.mxu1 }
 0xdfe   : > { %v2227_v0 = vadd.f32 %v2918_v63, %v2226_v62 }
 0xe00   : > { %v2231_v6 = vmax.f32 %v2227_v0, 0.0 }
 0xe05   : > { %v2228_v3 = vpop.f32.mrf.mxu1 }
 0xe06   : > { %v2229_v5 = vadd.f32 %v2918_v63, %v2228_v3 }
 0xe08   : > { %v2232_v7 = vmax.f32 %v2229_v5, 0.0 }
 0xe0a   : > { %v2233_v10 = vpack.c.bf16 %v2232_v7, %v2231_v6 }
 0xe0c   : > { %2727 = vmatmul.msk.bf16.vlgmr.msra.gmra.mxu2 %vm2267_vm10, %v2233_v10 }
 0xe8f   : > { %v2280_v1 = vpop.f32.mrf.mxu2 }
 0xe90   : > { %v2281_v11 = vadd.f32 %v2280_v1, %v2242_v52 }
 0xe92   : > { %v2285_v13 = vadd.f32 %v2281_v11, %v3934_v57 }
 0xe94   : > { %2287 = vst.msk [vmem:[#allocation2] sm:$0xff] %vm795_vm1, %v2285_v13 }
 0xe97   : > { %v2282_v15 = vpop.f32.mrf.mxu2 }
 0xe98   : > { %v2283_v14 = vadd.f32 %v2282_v15, %v2242_v52  ;;  %2292 = sbr.rel (%p2728_p3) target bundleno = 4018 (0xfb2), region = 112 }
 0xe9a   : > { %v2286_v16 = vadd.f32 %v2283_v14, %v3939_v26 }
 0xe9c   : > { %2288 = vst.msk [vmem:[#allocation2 + $0x8] sm:$0xff] %vm795_vm1, %v2286_v16 }
 0xe9d   : > { %v2295_v18 = vsel %vm795_vm1, %v2285_v13, 0.0  ;;  %v2298_v8 = vsel %vm795_vm1, %v2286_v16, 0.0  ;;  %v2999_v36 = vld [vmem:[%s4068_s28] ss:$0 sm:$0xff] }
 0xe9e   : > { %2296 = vadd.xlane.f32.xlu0 %v2295_v18  ;;  %v3000_v39 = vld [vmem:[%s4069_s0] ss:$0 sm:$0xff] }
 0xea6   : > { %2299 = vadd.xlane.f32.xlu0 %v2298_v8 }
 0xf11   : > { %v2297_v42 = vpop.xlane.xlu0 %2296 }
 0xf12   : > { %v2301_v57 = vmul.f32 %v2297_v42, %v3626_v12 }
 0xf14   : > { %v2303_v19 = vsub.f32 %v2285_v13, %v2301_v57 }
 0xf16   : > { %v2305_v20 = vmul.f32 %v2303_v19, %v2303_v19 }
 0xf18   : > { %v2307_v21 = vsel %vm795_vm1, %v2305_v20, 0.0 }
 0xf19   : > { %2308 = vadd.xlane.f32.xlu1 %v2307_v21  ;;  %v2300_v26 = vpop.xlane.xlu0 %2299 }
 0xf1a   : > { %v2302_v22 = vmul.f32 %v2300_v26, %v3626_v12 }
 0xf1c   : > { %v2304_v46 = vsub.f32 %v2286_v16, %v2302_v22 }
 0xf1e   : > { %v2306_v23 = vmul.f32 %v2304_v46, %v2304_v46 }
 0xf20   : > { %v2310_v24 = vsel %vm795_vm1, %v2306_v23, 0.0 }
 0xf21   : > { %2311 = vadd.xlane.f32.xlu1 %v2310_v24 }
 0xf8c   : > { %v2309_v25 = vpop.xlane.xlu1 %2308 }
 0xf8d   : > { %v2313_v27 = vmul.f32 %v2309_v25, %v3626_v12 }
 0xf8f   : > { %v2315_v29 = vadd.f32 1e-05, %v2313_v27 }
 0xf91   : > { %3001 = vrsqrt.f32 %v2315_v29  ;;  %vm2323_vm12 = vweird.f32 %v2315_v29 }
 0xf94   : > { %v2312_v30 = vpop.xlane.xlu1 %2311 }
 0xf95   : > { %v2314_v9 = vmul.f32 %v2312_v30, %v3626_v12 }
 0xf97   : > { %v3002_v31 = vpop.eup %3001  ;;  %v2316_v28 = vadd.f32 1e-05, %v2314_v9 }
 0xf98   : > { %v2318_v47 = vmul.f32 %v3002_v31, %v2315_v29  ;;  %vm2324_vm11 = vweird.f32 %v3002_v31 }
 0xf99   : > { %3003 = vrsqrt.f32 %v2316_v28  ;;  %vm2325_vm13 = vmor %vm2323_vm12, %vm2324_vm11  ;;  %vm2333_vm15 = vweird.f32 %v2316_v28 }
 0xf9a   : > { %v2319_v17 = vmul.f32 %v3002_v31, %v2318_v47 }
 0xf9c   : > { %v2320_v58 = vmul.f32 0.5, %v2319_v17 }
 0xf9e   : > { %v2321_v32 = vsub.f32 1.5, %v2320_v58 }
 0xf9f   : > { %v3004_v33 = vpop.eup %3003 }
 0xfa0   : > { %v2322_v34 = vmul.f32 %v3002_v31, %v2321_v32  ;;  %v2328_v35 = vmul.f32 %v3004_v33, %v2316_v28  ;;  %vm2334_vm14 = vweird.f32 %v3004_v33 }
 0xfa1   : > { %vm2335_vm0 = vmor %vm2333_vm15, %vm2334_vm14 }
 0xfa2   : > { %v2326_v37 = vsel %vm2325_vm13, %v3002_v31, %v2322_v34  ;;  %v2329_v38 = vmul.f32 %v3004_v33, %v2328_v35 }
 0xfa3   : > { %v2337_v12 = vmul.f32 %v2326_v37, %v2303_v19 }
 0xfa4   : > { %v2330_v40 = vmul.f32 0.5, %v2329_v38 }
 0xfa5   : > { %v2342_v43 = vmul.f32 %v2999_v36, %v2337_v12 }
 0xfa6   : > { %v2331_v44 = vsub.f32 1.5, %v2330_v40 }
 0xfa7   : > { %v2347_v45 = vadd.f32 %v3000_v39, %v2342_v43 }
 0xfa8   : > { %v2332_v48 = vmul.f32 %v3004_v33, %v2331_v44 }
 0xfa9   : > { %2349 = vst.msk [vmem:[#allocation15] sm:$0xff] %vm795_vm1, %v2347_v45 }
 0xfaa   : > { %v2336_v49 = vsel %vm2335_vm0, %v3004_v33, %v2332_v48 }
 0xfab   : > { %v2338_v2 = vmul.f32 %v2336_v49, %v2304_v46 }
 0xfad   : > { %v2343_v50 = vmul.f32 %v2999_v36, %v2338_v2 }
 0xfaf   : > { %v2348_v41 = vadd.f32 %v3000_v39, %v2343_v50 }
 0xfb1   : > { %2350 = vst.msk [vmem:[#allocation15 + $0x8] sm:$0xff] %vm795_vm1, %v2348_v41 }
 0xfb2 PF: > { %p2813_p4 = scmp.eq.s32.totalorder %s3440_s19, 1  ;;  %s4070_s23 = sld [smem:[#allocation37_spill]] }
 0xfb3   : > { %s3334_s11 = smov [#allocation15]   ;;  %s3335_s21 = smov 128  }
 0xfb4   : > { %s2359_s14 = sshll.u32 %s3334_s11, 4  ;;  %s2360_s14 = int_to_ptr.vmem [resolvable:$true] %s2359_s14 }
 0xfb8   : > { %s2361_s26 = sshll.u32 %s4070_s23, 4  ;;  %s2362_s26 = int_to_ptr.hbm [resolvable:$true] %s2361_s26 }
 0xfb9   : > { %2780 = dma.vmem_to_hbm [thread:$0]  (%p2813_p4), %s2360_s14, 256, %s2362_s26, [#allocation5], %s3335_s21, %s3335_s21, %s3331_s2  }
 0xfba   : > { %3284 = dma.done.wait (%p2813_p4), [#allocation5], 256  }
 0xfbb   : > { %3286 = vsyncadd (%p2813_p4), [#allocation5], 4294967040 }
 0xfbc PF: > { %s4071_s20 = sld [smem:[#allocation23_spill]]  ;;  %s4076_s29 = smov %s3293_s30 }
 0xfbd   : > { %s4072_s9 = sld [smem:[#allocation21_spill]] }
 0xfbe   : > { %s4073_s15 = sld [smem:[#allocation25_spill]] }
 0xfbf   : > { %s4074_s16 = sld [smem:[#allocation22_spill]] }
 0xfc0   : > { %s4075_s17 = sld [smem:[#allocation24_spill]] }
 0xfc2   : > { %s33_s18 = sadd.s32 1, %s4071_s20  }
 0xfc3   : > { %p30_p5 = scmp.ge.s32.totalorder %s33_s18, 4   ;;  %s4077_s30 = smov %s4072_s9 }
 0xfc5   :  { %32 = sbr.rel (!%p30_p5) target bundleno = 22 (0x16), region = 187 }
 0xfca   :  { %2378 = vsyncpa [#allocation4], 1 }
 0xfcb   :  { %2380 = vsyncpa [#allocation4 + $0x1], 1 }
 0xfcc   :  { %2381 = vsyncpa [#allocation7], 1 }
 0xfcd   :  { %2382 = vsyncpa [#allocation10], 1 }
 0xfce   :  { %2384 = vsyncpa [#allocation10 + $0x1], 1 }
 0xfcf   :  { %2385 = vsyncpa [#allocation13], 1 }
 0xfd0   :  { %2387 = vsyncpa [#allocation13 + $0x1], 1 }
 0xfd1   :  { %2388 = vsyncpa [#allocation5], 1 }
 0xfd2   :  { %2390 = vsyncpa [#allocation5 + $0x1], 1 }

</bundles_post_ra>
